<compile_context>
chip_gen: v7x
topology: tpu7x:2x2x1
jax: 0.10.0
libtpu: 0.0.40
codegen_flags: <defaults>
</compile_context>

<pallas_src>
import functools

import jax
import jax.numpy as jnp
from jax.experimental import pallas as pl
from jax.experimental.pallas import tpu as pltpu


# ----------------------------------------------------------------------------
# Shared channel-attention math (runs once per batch element, all in f32)
# ----------------------------------------------------------------------------
def _gate_math(stacked, w1_ref, b1_ref, w2_ref, b2_ref, wg_ref, bg_ref, noise):
    """stacked: (C, 2) = [avg | max] columns.  Returns the (C, 1) hard gate (0./1.)."""
    C = stacked.shape[0]
    # Shared MLP applied to both pooled branches at once: (hid, C) @ (C, 2) -> (hid, 2)
    h = jnp.dot(w1_ref[...], stacked, preferred_element_type=jnp.float32) + b1_ref[...]
    h = jnp.maximum(h, 0.0)
    hsum = jnp.sum(h, axis=1, keepdims=True)                      # relu(W1 avg)+relu(W1 max), (hid,1)
    # Linear2 + 1x1 Conv + folded BatchNorm collapsed into one matmul (host-side fold), then ReLU6.
    g = jnp.dot(w2_ref[...], hsum, preferred_element_type=jnp.float32) + b2_ref[...]   # (C, 1)
    g = jnp.clip(g, 0.0, 6.0)
    # Grouped 1x1 conv -> two logits per channel, plus Gumbel noise; T > 0 => no divide needed.
    logits = g * wg_ref[...] + bg_ref[...] + noise                # (C, 2)
    slot = jax.lax.broadcasted_iota(jnp.int32, (C, 2), 1)
    diff = jnp.sum(jnp.where(slot == 1, logits, -logits), axis=1, keepdims=True)  # l1 - l0
    return (diff > 0.0).astype(jnp.float32)                       # exact ties -> 0


# ----------------------------------------------------------------------------
# Single-pass kernel: one grid step per batch element, slab resident in VMEM
# ----------------------------------------------------------------------------
def gate_cbam_fused_kernel(x_ref, w1_ref, b1_ref, w2_ref, b2_ref, wg_ref, bg_ref,
                           noise_ref, xout_ref, gate_ref, *, inv_hw):
    x = x_ref[0]                                   # (C, HW), streaming dtype (f32 or bf16)
    xf = x.astype(jnp.float32)
    avg = jnp.sum(xf, axis=-1, keepdims=True) * inv_hw
    mx = jnp.max(xf, axis=-1, keepdims=True)
    slot = jax.lax.broadcasted_iota(jnp.int32, (avg.shape[0], 2), 1)
    stacked = jnp.where(slot == 0, avg, mx)        # (C, 2) = [avg | max]
    gate = _gate_math(stacked, w1_ref, b1_ref, w2_ref, b2_ref, wg_ref, bg_ref, noise_ref[0])
    gate_ref[0] = gate.astype(gate_ref.dtype)
    xout_ref[0] = (x * gate.astype(x.dtype)).astype(xout_ref.dtype)


# ----------------------------------------------------------------------------
# Two-pass streaming kernel (slab too large for VMEM): phase 0 pools, phase 1 applies
# ----------------------------------------------------------------------------
def gate_cbam_tiled_kernel(x_ref, w1_ref, b1_ref, w2_ref, b2_ref, wg_ref, bg_ref,
                           noise_ref, xout_ref, gate_ref, pool_sc, gate_sc,
                           *, inv_hw, hw, hw_tile):
    phase = pl.program_id(1)
    t = pl.program_id(2)
    n_t = pl.num_programs(2)
    C = pool_sc.shape[0]

    slot = jax.lax.broadcasted_iota(jnp.int32, (C, 2), 1)
    is_sum = slot == 0        # column 0: running spatial SUM, column 1: running spatial MAX

    @pl.when((phase == 0) & (t == 0))
    def _init():
        pool_sc[...] = jnp.where(is_sum, 0.0, -jnp.inf).astype(jnp.float32)
        # Defensive fill of the parked output windows: guards the review's revisit-semantics
        # concern; these buffers are fully rewritten before they are ever flushed to HBM.
        xout_ref[...] = jnp.zeros(xout_ref.shape, xout_ref.dtype)
        gate_ref[...] = jnp.zeros(gate_ref.shape, gate_ref.dtype)

    @pl.when(phase == 0)
    def _pool():
        x = x_ref[0].astype(jnp.float32)                          # (C, hw_tile)
        # Mask the ragged last tile (reads past HW are unspecified).
        valid = (jax.lax.broadcasted_iota(jnp.int32, x.shape, 1) + t * hw_tile) < hw
        s = jnp.sum(jnp.where(valid, x, 0.0), axis=-1, keepdims=True)
        m = jnp.max(jnp.where(valid, x, -jnp.inf), axis=-1, keepdims=True)
        pool = pool_sc[...]
        pool_sc[...] = jnp.where(is_sum, pool + s, jnp.maximum(pool, m))

    @pl.when((phase == 0) & (t == n_t - 1))
    def _gate():
        stacked = pool_sc[...] * jnp.where(is_sum, inv_hw, 1.0)   # (C, 2) = [avg | max]
        gate = _gate_math(stacked, w1_ref, b1_ref, w2_ref, b2_ref, wg_ref, bg_ref, noise_ref[0])
        gate_sc[...] = gate
        gate_ref[0] = gate.astype(gate_ref.dtype)

    @pl.when(phase == 1)
    def _apply():
        x = x_ref[0]
        # OOB lanes of a ragged last tile hold garbage, but their writes are discarded.
        xout_ref[0] = (x * gate_sc[...].astype(x.dtype)).astype(xout_ref.dtype)


# ----------------------------------------------------------------------------
# Host-side parameter fold + wrapper
# ----------------------------------------------------------------------------
def fold_params(raw, eps=1e-5):
    """Fold Linear2 + 1x1 Conv + inference BatchNorm into one (C, hid) matmul + bias,
    and lay every per-channel vector out as a column (channels on sublanes)."""
    bns = raw["bn_gamma"] / jnp.sqrt(raw["bn_var"] + eps)
    bnb = raw["bn_beta"] - raw["bn_mean"] * bns
    w2f = (bns[:, None] * raw["conv_w"]) @ raw["lin2_w"]                        # (C, hid)
    b2f = bns * (2.0 * (raw["conv_w"] @ raw["lin2_b"]) + raw["conv_b"]) + bnb   # (C,)
    return dict(
        w1=raw["lin1_w"],                  # (hid, C)
        b1=raw["lin1_b"][:, None],         # (hid, 1)
        w2=w2f,                            # (C, hid)  = diag(bns) @ Wc @ W2
        b2=b2f[:, None],                   # (C, 1)
        # grouped conv: output channel 2c+k <-> gate slot k of channel c
        wg=jnp.stack([raw["gl_w"][0::2], raw["gl_w"][1::2]], axis=1),   # (C, 2)
        bg=jnp.stack([raw["gl_b"][0::2], raw["gl_b"][1::2]], axis=1),   # (C, 2)
    )


def gate_module_cbam(x, params, noise, temperature=1.0, *,
                     single_pass=None, hw_tile=None,
                     vmem_budget_bytes=14 << 20, tile_cap_bytes=2 << 20):
    """Forward of GateModuleCBAM.  Returns (x * gate, gate) with shapes (B,C,H,W), (B,C,1)."""
    assert float(temperature) > 0.0, "hard Gumbel argmax requires T > 0"
    B, C, H, W = x.shape
    HW = H * W
    x3 = x.reshape(B, C, HW)
    out_dtype = x.dtype

    param_order = ("w1", "b1", "w2", "b2", "wg", "bg")
    p_list = [params[k] for k in param_order]
    # Conservative VMEM estimate: Pallas double-buffers every input/output block.
    const_bytes = (sum(2 * a.size * a.dtype.itemsize for a in p_list)
                   + 2 * noise.size * noise.dtype.itemsize)
    slab_bytes = C * HW * x.dtype.itemsize

    if single_pass is None:
        single_pass = (4 * slab_bytes + const_bytes) <= vmem_budget_bytes

    if single_pass:
        # grid = (B,): one visit per batch element, 2x HBM traffic of x (read + write).
        kernel = functools.partial(gate_cbam_fused_kernel, inv_hw=1.0 / float(HW))

        def cspec(a):
            nd = a.ndim
            return pl.BlockSpec(a.shape, lambda b, _nd=nd: (0,) * _nd)

        in_specs = ([pl.BlockSpec((1, C, HW), lambda b: (b, 0, 0))]
                    + [cspec(a) for a in p_list]
                    + [pl.BlockSpec((1, C, 2), lambda b: (b, 0, 0))])
        out_specs = (pl.BlockSpec((1, C, HW), lambda b: (b, 0, 0)),
                     pl.BlockSpec((1, C, 1), lambda b: (b, 0, 0)))
        grid = (B,)
        scratch_shapes = []
        dims = ("parallel",)        # batch axis shards across v7x's 2 TCs (no-op on v5e/v6e)
    else:
        if hw_tile is None:
            # ~tile_cap_bytes per x tile (2 in + 2 out buffers => 4x), 128-lane aligned.
            cap_lanes = max(128, (tile_cap_bytes // (x.dtype.itemsize * C)) // 128 * 128)
            hw_tile = cap_lanes
        if hw_tile >= HW:
            hw_tile = HW            # full spatial extent is always a legal block shape
        else:
            assert hw_tile % 128 == 0, "partial spatial tiles must be 128-lane aligned"
        n_t = pl.cdiv(HW, hw_tile)  # ragged last tile is masked inside the kernel

        kernel = functools.partial(gate_cbam_tiled_kernel,
                                   inv_hw=1.0 / float(HW), hw=HW, hw_tile=hw_tile)

        def cspec(a):
            nd = a.ndim
            return pl.BlockSpec(a.shape, lambda b, p, t, _nd=nd: (0,) * _nd)

        in_specs = ([pl.BlockSpec((1, C, hw_tile), lambda b, p, t: (b, 0, t))]
                    + [cspec(a) for a in p_list]
                    + [pl.BlockSpec((1, C, 2), lambda b, p, t: (b, 0, 0))])
        out_specs = (
            # phase 0 parks the xout window on tile 0 (defensively zero-filled, rewritten
            # by phase 1 t=0 before any flush); phase 1 walks the tiles lane-dense.
            pl.BlockSpec((1, C, hw_tile), lambda b, p, t: (b, 0, t * p)),
            pl.BlockSpec((1, C, 1), lambda b, p, t: (b, 0, 0)),
        )
        grid = (B, 2, n_t)
        scratch_shapes = [pltpu.VMEM((C, 2), jnp.float32),   # running [sum | max]
                          pltpu.VMEM((C, 1), jnp.float32)]   # resident gate
        dims = ("parallel", "arbitrary", "arbitrary")

    xout, gate = pl.pallas_call(
        kernel,
        out_shape=(jax.ShapeDtypeStruct((B, C, HW), out_dtype),
                   jax.ShapeDtypeStruct((B, C, 1), out_dtype)),
        grid_spec=pltpu.PrefetchScalarGridSpec(
            num_scalar_prefetch=0,
            grid=grid,
            in_specs=in_specs,
            out_specs=out_specs,
            scratch_shapes=scratch_shapes),
        compiler_params=pltpu.CompilerParams(dimension_semantics=dims),
    )(x3, *p_list, noise)

    return xout.reshape(B, C, H, W), gate


# ----------------------------------------------------------------------------
# Pure-JAX reference (mirrors the PyTorch module, unfused parameters)
# ----------------------------------------------------------------------------
def reference(x, raw, noise, temperature, eps=1e-5):
    avg = jnp.mean(x, axis=(2, 3))
    mx = jnp.max(x, axis=(2, 3))

    def mlp(v):
        h = jnp.maximum(v @ raw["lin1_w"].T + raw["lin1_b"], 0.0)
        return h @ raw["lin2_w"].T + raw["lin2_b"]

    ps = mlp(avg) + mlp(mx)
    h = ps @ raw["conv_w"].T + raw["conv_b"]
    h = (h - raw["bn_mean"]) / jnp.sqrt(raw["bn_var"] + eps) * raw["bn_gamma"] + raw["bn_beta"]
    h = jnp.clip(h, 0.0, 6.0)
    l0 = h * raw["gl_w"][0::2] + raw["gl_b"][0::2]
    l1 = h * raw["gl_w"][1::2] + raw["gl_b"][1::2]
    d = (l1 + noise[..., 1]) / temperature - (l0 + noise[..., 0]) / temperature
    gate = (d > 0).astype(x.dtype)
    return x * gate[:, :, None, None], gate, d


if __name__ == "__main__":
    # Small shapes consistent with the module; C=128 keeps the channel axis aligned.
    B, C, H, W = 2, 128, 16, 16
    hidden = C                 # reduction_ratio = 1.0 -> hidden_dim == in_ch
    eps = 1e-5

    key = jax.random.PRNGKey(0)
    ks = jax.random.split(key, 15)

    x = jax.random.normal(ks[0], (B, C, H, W), jnp.float32)

    # Deterministic synthetic parameters (shapes follow the PyTorch __init__).
    raw = dict(
        lin1_w=0.1 * jax.random.normal(ks[1], (hidden, C), jnp.float32),
        lin1_b=0.1 * jax.random.normal(ks[2], (hidden,), jnp.float32),
        lin2_w=0.1 * jax.random.normal(ks[3], (C, hidden), jnp.float32),
        lin2_b=0.1 * jax.random.normal(ks[4], (C,), jnp.float32),
        conv_w=0.1 * jax.random.normal(ks[5], (C, C), jnp.float32),
        conv_b=0.1 * jax.random.normal(ks[6], (C,), jnp.float32),
        bn_gamma=1.0 + 0.1 * jax.random.normal(ks[7], (C,), jnp.float32),
        bn_beta=0.1 * jax.random.normal(ks[8], (C,), jnp.float32),
        bn_mean=0.1 * jax.random.normal(ks[9], (C,), jnp.float32),
        bn_var=jax.random.uniform(ks[10], (C,), jnp.float32, 0.5, 1.5),
        gl_w=jax.random.normal(ks[11], (2 * C,), jnp.float32),
        gl_b=0.1 * jax.random.normal(ks[12], (2 * C,), jnp.float32),
    )
    params = fold_params(raw, eps=eps)

    # Gumbel noise g = -log(eps - log(u + eps)), u ~ U(0,1); packed as (B, C, 2).
    geps = 1e-10
    u = jax.random.uniform(ks[13], (B, C, 2), jnp.float32)
    noise = -jnp.log(geps - jnp.log(u + geps))

    xr, gr, dref = reference(x, raw, noise, 1.0, eps=eps)

    def check(x_in, xout, gate, x_ref_out, g_ref, d_ref, tag):
        B_, C_, H_, W_ = x_in.shape
        assert xout.shape == (B_, C_, H_, W_) and gate.shape == (B_, C_, 1), tag
        g2 = gate[:, :, 0].astype(jnp.float32)
        grf = g_ref.astype(jnp.float32)
        # gates agree everywhere except (possibly) numerically tied noisy logits
        assert bool(jnp.all((g2 == grf) | (jnp.abs(d_ref) < 1e-3))), f"{tag}: gate mismatch"
        # gated output is exactly x * (kernel gate)
        assert bool(jnp.array_equal(xout, x_in * gate[:, :, :, None])), f"{tag}: xout != x * gate"
        # and matches the reference output wherever the gates agree
        agree = (g2 == grf)[:, :, None, None]
        assert bool(jnp.allclose(jnp.where(agree, xout, 0.0), jnp.where(agree, x_ref_out, 0.0),
                                 atol=1e-5, rtol=1e-5)), f"{tag}: output mismatch vs reference"

    # 1) single-pass mode (auto-selected: the 128 KiB per-batch slab easily fits VMEM)
    xout, gate = gate_module_cbam(x, params, noise, temperature=1.0)
    jax.block_until_ready((xout, gate))
    check(x, xout, gate, xr, gr, dref, "single-pass")

    # 2) forced two-pass streaming path with 128-lane tiles (n_hw_tiles = 2)
    xout2, gate2 = gate_module_cbam(x, params, noise, temperature=1.0,
                                    single_pass=False, hw_tile=128)
    jax.block_until_ready((xout2, gate2))
    check(x, xout2, gate2, xr, gr, dref, "two-pass")

    # 3) two-pass with a ragged (masked) last spatial tile: HW = 15*15 = 225, tile = 128
    x_r = jax.random.normal(ks[14], (B, C, 15, 15), jnp.float32)
    xr_r, gr_r, dref_r = reference(x_r, raw, noise, 1.0, eps=eps)
    xo_r, g_r = gate_module_cbam(x_r, params, noise, temperature=1.0,
                                 single_pass=False, hw_tile=128)
    jax.block_until_ready((xo_r, g_r))
    check(x_r, xo_r, g_r, xr_r, gr_r, dref_r, "ragged two-pass")

    # 4) bf16 streaming smoke test (halves HBM bytes; gate math stays f32 in-kernel)
    xb = x.astype(jnp.bfloat16)
    xo_b, g_b = gate_module_cbam(xb, params, noise, temperature=1.0)
    jax.block_until_ready((xo_b, g_b))
    assert xo_b.dtype == jnp.bfloat16 and g_b.shape == (B, C, 1)
    gbf = g_b.astype(jnp.float32)
    assert bool(jnp.all((gbf == 0.0) | (gbf == 1.0))), "bf16: gate not binary"
    assert bool(jnp.array_equal(xo_b, xb * g_b[:, :, :, None])), "bf16: xout != x * gate"

    print("KERNEL_OK")
</pallas_src>

<mosaic_0001>
module attributes {stable_mosaic.version = 11 : i64} {
  func.func @gate_cbam_fused_kernel(%arg0: i32, %arg1: memref<1x128x256xf32, #tpu.memory_space<vmem>>, %arg2: memref<128x128xf32, #tpu.memory_space<vmem>>, %arg3: memref<128x1xf32, #tpu.memory_space<vmem>>, %arg4: memref<128x128xf32, #tpu.memory_space<vmem>>, %arg5: memref<128x1xf32, #tpu.memory_space<vmem>>, %arg6: memref<128x2xf32, #tpu.memory_space<vmem>>, %arg7: memref<128x2xf32, #tpu.memory_space<vmem>>, %arg8: memref<1x128x2xf32, #tpu.memory_space<vmem>>, %arg9: memref<1x128x256xf32, #tpu.memory_space<vmem>>, %arg10: memref<1x128x1xf32, #tpu.memory_space<vmem>>) attributes {dimension_semantics = [#tpu.dimension_semantics<parallel>], iteration_bounds = array<i64: 2>, scalar_prefetch = 0 : i64, scratch_operands = 0 : i64, tpu.core_type = #tpu.core_type<tc>, window_params = [{transform_indices = @transform_0, window_bounds = array<i64: 1, 128, 256>}, {pipeline_mode = #tpu.pipeline_mode<synchronous>, transform_indices = @transform_1, window_bounds = array<i64: 128, 128>}, {pipeline_mode = #tpu.pipeline_mode<synchronous>, transform_indices = @transform_2, window_bounds = array<i64: 128, 1>}, {pipeline_mode = #tpu.pipeline_mode<synchronous>, transform_indices = @transform_3, window_bounds = array<i64: 128, 128>}, {pipeline_mode = #tpu.pipeline_mode<synchronous>, transform_indices = @transform_4, window_bounds = array<i64: 128, 1>}, {pipeline_mode = #tpu.pipeline_mode<synchronous>, transform_indices = @transform_5, window_bounds = array<i64: 128, 2>}, {pipeline_mode = #tpu.pipeline_mode<synchronous>, transform_indices = @transform_6, window_bounds = array<i64: 128, 2>}, {transform_indices = @transform_7, window_bounds = array<i64: 1, 128, 2>}, {transform_indices = @transform_8, window_bounds = array<i64: 1, 128, 256>}, {transform_indices = @transform_9, window_bounds = array<i64: 1, 128, 1>}]} {
    %c0 = arith.constant 0 : index
    %c0_0 = arith.constant 0 : index
    %c0_1 = arith.constant 0 : index
    %0 = vector.load %arg1[%c0, %c0_0, %c0_1] : memref<1x128x256xf32, #tpu.memory_space<vmem>>, vector<1x128x256xf32>
    %1 = vector.shape_cast %0 : vector<1x128x256xf32> to vector<128x256xf32>
    %cst = arith.constant dense<0.000000e+00> : vector<128xf32>
    %2 = vector.multi_reduction <add>, %1, %cst [1] : vector<128x256xf32> to vector<128xf32>
    %3 = vector.shape_cast %2 : vector<128xf32> to vector<128x1xf32>
    %cst_2 = arith.constant 3.906250e-03 : f32
    %4 = vector.broadcast %cst_2 : f32 to vector<128x1xf32>
    %5 = arith.mulf %3, %4 : vector<128x1xf32>
    %cst_3 = arith.constant dense<0xFF800000> : vector<128xf32>
    %6 = vector.multi_reduction <maximumf>, %1, %cst_3 [1] : vector<128x256xf32> to vector<128xf32>
    %7 = vector.shape_cast %6 : vector<128xf32> to vector<128x1xf32>
    %8 = tpu.iota {dimensions = array<i32: 1>} : vector<128x2xi32>
    %c0_i32 = arith.constant 0 : i32
    %9 = vector.broadcast %c0_i32 : i32 to vector<128x2xi32>
    %10 = arith.cmpi eq, %8, %9 : vector<128x2xi32>
    %11 = vector.shape_cast %5 : vector<128x1xf32> to vector<128x1xf32>
    %12 = vector.broadcast %11 : vector<128x1xf32> to vector<128x2xf32>
    %13 = vector.shape_cast %7 : vector<128x1xf32> to vector<128x1xf32>
    %14 = vector.broadcast %13 : vector<128x1xf32> to vector<128x2xf32>
    %15 = arith.select %10, %12, %14 : vector<128x2xi1>, vector<128x2xf32>
    %c0_4 = arith.constant 0 : index
    %c0_5 = arith.constant 0 : index
    %c0_6 = arith.constant 0 : index
    %16 = vector.load %arg8[%c0_4, %c0_5, %c0_6] : memref<1x128x2xf32, #tpu.memory_space<vmem>>, vector<1x128x2xf32>
    %17 = vector.shape_cast %16 : vector<1x128x2xf32> to vector<128x2xf32>
    %c0_7 = arith.constant 0 : index
    %c0_8 = arith.constant 0 : index
    %18 = vector.load %arg2[%c0_7, %c0_8] : memref<128x128xf32, #tpu.memory_space<vmem>>, vector<128x128xf32>
    %cst_9 = arith.constant dense<0.000000e+00> : vector<128x2xf32>
    %19 = tpu.matmul %18, %15, %cst_9 {dimension_numbers = #tpu.dot_dimension_numbers<[1], [0], [0], [1], [0, 0, 1, 1], [], []>} : vector<128x128xf32>, vector<128x2xf32>, vector<128x2xf32> -> vector<128x2xf32>
    %c0_10 = arith.constant 0 : index
    %c0_11 = arith.constant 0 : index
    %20 = vector.load %arg3[%c0_10, %c0_11] : memref<128x1xf32, #tpu.memory_space<vmem>>, vector<128x1xf32>
    %21 = vector.broadcast %20 : vector<128x1xf32> to vector<128x2xf32>
    %22 = arith.addf %19, %21 : vector<128x2xf32>
    %cst_12 = arith.constant 0.000000e+00 : f32
    %23 = vector.broadcast %cst_12 : f32 to vector<128x2xf32>
    %24 = arith.maximumf %22, %23 : vector<128x2xf32>
    %cst_13 = arith.constant dense<0.000000e+00> : vector<128xf32>
    %25 = vector.multi_reduction <add>, %24, %cst_13 [1] : vector<128x2xf32> to vector<128xf32>
    %26 = vector.shape_cast %25 : vector<128xf32> to vector<128x1xf32>
    %c0_14 = arith.constant 0 : index
    %c0_15 = arith.constant 0 : index
    %27 = vector.load %arg4[%c0_14, %c0_15] : memref<128x128xf32, #tpu.memory_space<vmem>>, vector<128x128xf32>
    %cst_16 = arith.constant dense<0.000000e+00> : vector<128x1xf32>
    %28 = tpu.matmul %27, %26, %cst_16 {dimension_numbers = #tpu.dot_dimension_numbers<[1], [0], [0], [1], [0, 0, 1, 1], [], []>} : vector<128x128xf32>, vector<128x1xf32>, vector<128x1xf32> -> vector<128x1xf32>
    %c0_17 = arith.constant 0 : index
    %c0_18 = arith.constant 0 : index
    %29 = vector.load %arg5[%c0_17, %c0_18] : memref<128x1xf32, #tpu.memory_space<vmem>>, vector<128x1xf32>
    %30 = arith.addf %28, %29 : vector<128x1xf32>
    %cst_19 = arith.constant 0.000000e+00 : f32
    %cst_20 = arith.constant 6.000000e+00 : f32
    %31 = vector.broadcast %cst_19 : f32 to vector<128x1xf32>
    %32 = arith.maximumf %31, %30 : vector<128x1xf32>
    %33 = vector.broadcast %cst_20 : f32 to vector<128x1xf32>
    %34 = arith.minimumf %33, %32 : vector<128x1xf32>
    %c0_21 = arith.constant 0 : index
    %c0_22 = arith.constant 0 : index
    %35 = vector.load %arg6[%c0_21, %c0_22] : memref<128x2xf32, #tpu.memory_space<vmem>>, vector<128x2xf32>
    %36 = vector.broadcast %34 : vector<128x1xf32> to vector<128x2xf32>
    %37 = arith.mulf %36, %35 : vector<128x2xf32>
    %c0_23 = arith.constant 0 : index
    %c0_24 = arith.constant 0 : index
    %38 = vector.load %arg7[%c0_23, %c0_24] : memref<128x2xf32, #tpu.memory_space<vmem>>, vector<128x2xf32>
    %39 = arith.addf %37, %38 : vector<128x2xf32>
    %40 = arith.addf %39, %17 : vector<128x2xf32>
    %41 = tpu.iota {dimensions = array<i32: 1>} : vector<128x2xi32>
    %c1_i32 = arith.constant 1 : i32
    %42 = vector.broadcast %c1_i32 : i32 to vector<128x2xi32>
    %43 = arith.cmpi eq, %41, %42 : vector<128x2xi32>
    %cst_25 = arith.constant 0.000000e+00 : f32
    %44 = vector.broadcast %cst_25 : f32 to vector<128x2xf32>
    %45 = arith.subf %44, %40 : vector<128x2xf32>
    %46 = arith.select %43, %40, %45 : vector<128x2xi1>, vector<128x2xf32>
    %cst_26 = arith.constant dense<0.000000e+00> : vector<128xf32>
    %47 = vector.multi_reduction <add>, %46, %cst_26 [1] : vector<128x2xf32> to vector<128xf32>
    %48 = vector.shape_cast %47 : vector<128xf32> to vector<128x1xf32>
    %cst_27 = arith.constant 0.000000e+00 : f32
    %49 = vector.broadcast %cst_27 : f32 to vector<128x1xf32>
    %50 = arith.cmpf ogt, %48, %49 : vector<128x1xf32>
    %51 = arith.extui %50 : vector<128x1xi1> to vector<128x1xi32>
    %52 = arith.sitofp %51 : vector<128x1xi32> to vector<128x1xf32>
    %c0_28 = arith.constant 0 : index
    %c0_29 = arith.constant 0 : index
    %c0_30 = arith.constant 0 : index
    %53 = vector.load %arg10[%c0_28, %c0_29, %c0_30] : memref<1x128x1xf32, #tpu.memory_space<vmem>>, vector<1x128x1xf32>
    %54 = vector.shape_cast %53 : vector<1x128x1xf32> to vector<128x1xf32>
    %55 = vector.shape_cast %52 : vector<128x1xf32> to vector<1x128x1xf32>
    tpu.vector_store %arg10[%c0_28, %c0_29, %c0_30], %55 {strides = array<i32>} : memref<1x128x1xf32, #tpu.memory_space<vmem>>, vector<1x128x1xf32>,
    %56 = vector.broadcast %52 : vector<128x1xf32> to vector<128x256xf32>
    %57 = arith.mulf %1, %56 : vector<128x256xf32>
    %c0_31 = arith.constant 0 : index
    %c0_32 = arith.constant 0 : index
    %c0_33 = arith.constant 0 : index
    %58 = vector.load %arg9[%c0_31, %c0_32, %c0_33] : memref<1x128x256xf32, #tpu.memory_space<vmem>>, vector<1x128x256xf32>
    %59 = vector.shape_cast %58 : vector<1x128x256xf32> to vector<128x256xf32>
    %60 = vector.shape_cast %57 : vector<128x256xf32> to vector<1x128x256xf32>
    tpu.vector_store %arg9[%c0_31, %c0_32, %c0_33], %60 {strides = array<i32>} : memref<1x128x256xf32, #tpu.memory_space<vmem>>, vector<1x128x256xf32>,
    return
  }
  func.func @transform_0(%arg0: i32) -> (i32, i32, i32) {
    %c0_i32 = arith.constant 0 : i32
    %c0_i32_0 = arith.constant 0 : i32
    %c0_i32_1 = arith.constant 0 : i32
    return %arg0, %c0_i32, %c0_i32_0 : i32, i32, i32
  }
  func.func @transform_1(%arg0: i32) -> (i32, i32) {
    %c0_i32 = arith.constant 0 : i32
    %c0_i32_0 = arith.constant 0 : i32
    %c0_i32_1 = arith.constant 0 : i32
    return %c0_i32, %c0_i32_0 : i32, i32
  }
  func.func @transform_2(%arg0: i32) -> (i32, i32) {
    %c0_i32 = arith.constant 0 : i32
    %c0_i32_0 = arith.constant 0 : i32
    %c0_i32_1 = arith.constant 0 : i32
    return %c0_i32, %c0_i32_0 : i32, i32
  }
  func.func @transform_3(%arg0: i32) -> (i32, i32) {
    %c0_i32 = arith.constant 0 : i32
    %c0_i32_0 = arith.constant 0 : i32
    %c0_i32_1 = arith.constant 0 : i32
    return %c0_i32, %c0_i32_0 : i32, i32
  }
  func.func @transform_4(%arg0: i32) -> (i32, i32) {
    %c0_i32 = arith.constant 0 : i32
    %c0_i32_0 = arith.constant 0 : i32
    %c0_i32_1 = arith.constant 0 : i32
    return %c0_i32, %c0_i32_0 : i32, i32
  }
  func.func @transform_5(%arg0: i32) -> (i32, i32) {
    %c0_i32 = arith.constant 0 : i32
    %c0_i32_0 = arith.constant 0 : i32
    %c0_i32_1 = arith.constant 0 : i32
    return %c0_i32, %c0_i32_0 : i32, i32
  }
  func.func @transform_6(%arg0: i32) -> (i32, i32) {
    %c0_i32 = arith.constant 0 : i32
    %c0_i32_0 = arith.constant 0 : i32
    %c0_i32_1 = arith.constant 0 : i32
    return %c0_i32, %c0_i32_0 : i32, i32
  }
  func.func @transform_7(%arg0: i32) -> (i32, i32, i32) {
    %c0_i32 = arith.constant 0 : i32
    %c0_i32_0 = arith.constant 0 : i32
    %c0_i32_1 = arith.constant 0 : i32
    return %arg0, %c0_i32, %c0_i32_0 : i32, i32, i32
  }
  func.func @transform_8(%arg0: i32) -> (i32, i32, i32) {
    %c0_i32 = arith.constant 0 : i32
    %c0_i32_0 = arith.constant 0 : i32
    %c0_i32_1 = arith.constant 0 : i32
    return %arg0, %c0_i32, %c0_i32_0 : i32, i32, i32
  }
  func.func @transform_9(%arg0: i32) -> (i32, i32, i32) {
    %c0_i32 = arith.constant 0 : i32
    %c0_i32_0 = arith.constant 0 : i32
    %c0_i32_1 = arith.constant 0 : i32
    return %arg0, %c0_i32, %c0_i32_0 : i32, i32, i32
  }
}

</mosaic_0001>

<bundles_post_ra>
// kernel: tpu_custom_call.1
= control target key start
LH: loop header
LB: loop body
LE: loop exit
PB: predicated region body
PF: predicated region fallthrough
CT: control target
= control target key end

     0   :  { %15 = vsyncpa [#allocation3], 0  ;;  %s2715_s0 = inlined_call_operand.vmem [shape: f32[2,128,256], index: 0, kind: input, shape index: {}]   ;;  %s2716_s1 = inlined_call_operand.vmem [shape: f32[128,128], index: 1, kind: input, shape index: {}]   ;;  %s2717_s2 = inlined_call_operand.vmem [shape: f32[128,1], index: 2, kind: input, shape index: {}]   ;;  %s2718_s3 = inlined_call_operand.vmem [shape: f32[128,128], index: 3, kind: input, shape index: {}]   ;;  %s2719_s4 = inlined_call_operand.vmem [shape: f32[128,1], index: 4, kind: input, shape index: {}]   ;;  %s2720_s5 = inlined_call_operand.vmem [shape: f32[128,2], index: 5, kind: input, shape index: {}]   ;;  %s2721_s6 = inlined_call_operand.vmem [shape: f32[128,2], index: 6, kind: input, shape index: {}]   ;;  %s2722_s7 = inlined_call_operand.vmem [shape: f32[2,128,2], index: 7, kind: input, shape index: {}]   ;;  %s2723_s8 = inlined_call_operand.hbm [shape: f32[2,128,256], index: 8, kind: output, shape index: {0}]   ;;  %s2724_s9 = inlined_call_operand.vmem [shape: f32[2,128,1], index: 9, kind: output, shape index: {1}]  }
   0x1   :  { %17 = vsyncpa [#allocation3 + $0x1], 0  ;;  %s2037_s30 = smov 0   ;;  %s2039_s10 = smov 0  }
   0x2   :  { %s2041_s11 = smov 0   ;;  %s2043_s12 = smov 0  }
   0x3 LB: > { %s2058_s13 = sadd.s32 4294967295, %s1980_s12   ;;  %s1565_s14 = sadd.s32 4294967294, %s1980_s12   ;;  %s1980_s12 = sphi %s2043_s12, %s2730_s12   ;;  %s1976_s11 = sphi %s2041_s11, %s2729_s11   ;;  %s1972_s10 = sphi %s2039_s10, %s2728_s10   ;;  %s1968_s30 = sphi %s2037_s30, %s2727_s30  }
   0x4   : > { %s2062_s15 = sadd.s32 1, %s1980_s12   ;;  %s208_s16 = sadd.s32 1, %s1976_s11 }
   0x5   : > { %s205_s17 = ssub.s32 %s1980_s12, %s2062_s15  ;;  %p218_p0 = scmp.ne.s32.totalorder %s1976_s11, %s1972_s10 }
   0x6   : > { %p206_p1 = scmp.eq.s32.totalorder %s205_s17, 0  ;;  %p219_p2 = scmp.eq.s32.totalorder %s2058_s13, 1 }
   0x7   : > { %p224_p3 = scmp.ne.s32.totalorder %s1972_s10, %s1968_s30  ;;  %p225_p4 = scmp.eq.s32.totalorder %s1565_s14, 1 }
   0x8   : > { %s2073_s18 = scalar_select %p206_p1, %s1976_s11, %s208_s16  }
   0x9   : > { %p2075_p5 = por %p219_p2, %p218_p0  ;;  %p2079_p6 = por %p225_p4, %p224_p3 }
   0xa   : > { %p1568_p7 = scmp.ge.s32.totalorder %s1980_s12, 1  ;;  %p303_p8 = scmp.lt.s32.totalorder %s1980_s12, 3 }
   0xc   : > { %p304_p9 = pnand %p1568_p7, %p303_p8 }
   0xd   : > { %p349_p10 = scmp.lt.s32.totalorder (!%p304_p9), %s2058_s13, 1  ;;  %vm816_vm1 = vcmask (!%p304_p9), 15360   ;;  %vm1363_vm3 = vcmask (!%p304_p9), 7168   ;;  %s1984_s28 = smov (!%p304_p9), [#allocation2]  }
   0xe   : > { %307 = sbr.rel (%p304_p9) target bundleno = 1183 (0x49f), region = 52  ;;  %s1922_s14 = sshll.u32 (!%p304_p9), %s1984_s28, 4  ;;  %s1923_s14 = int_to_ptr.vmem [resolvable:$false] %s1922_s14 }
  0x15   : > { %s2087_s21 = scalar_select %p349_p10, %s2058_s13, 1 }
  0x17   : > { %s1597_s22 = sshll.u32 %s2087_s21, 8  ;;  %s1598_s23 = sshll.u32 %s2087_s21, 7 }
  0x18   : > { %s2093_s25 = scalar_lea.vmem %s2715_s0, %s1597_s22  ;;  %s2379_s29 = scalar_lea.vmem %s2722_s7, %s1598_s23 }
  0x19   : > { %v364_v0 = vld [vmem:[%s2093_s25] sm:$0xff]  ;;  %v365_v1 = vld [vmem:[%s2093_s25 + $0x8] sm:$0xff]  ;;  %v366_v2 = vld [vmem:[%s2093_s25 + $0x10] sm:$0xff]  ;;  %s2547_s16 = scalar_lea.vmem %s2724_s9, %s1598_s23  ;;  %s1600_s23 = sshll.u32 %s2058_s13, 12 }
  0x1a   : > { %v460_v3 = vmax.f32 %v364_v0, %v365_v1  ;;  %v396_v4 = vadd.f32 %v365_v1, %v364_v0  ;;  %v367_v5 = vld [vmem:[%s2093_s25 + $0x18] sm:$0xff]  ;;  %v370_v8 = vld [vmem:[%s2093_s25 + $0x30] sm:$0xff]  ;;  %v368_v10 = vld [vmem:[%s2093_s25 + $0x20] sm:$0xff]  ;;  %s2660_s24 = scalar_lea.hbm %s2723_s8, %s1600_s23 }
  0x1b   : > { %v463_v6 = vmax.f32 %v366_v2, %v367_v5  ;;  %v399_v7 = vadd.f32 %v367_v5, %v366_v2  ;;  %v371_v9 = vld [vmem:[%s2093_s25 + $0x38] sm:$0xff]  ;;  %v369_v11 = vld [vmem:[%s2093_s25 + $0x28] sm:$0xff]  ;;  %v374_v16 = vld [vmem:[%s2093_s25 + $0x50] sm:$0xff]  ;;  %v1982_v2 = vmov 0  }
  0x1c   : > { %461 = vmax.xlane.f32.xlu1 %v460_v3  ;;  %397 = vadd.xlane.f32.xlu0 %v396_v4  ;;  %v405_v12 = vadd.f32 %v371_v9, %v370_v8  ;;  %v402_v13 = vadd.f32 %v369_v11, %v368_v10  ;;  %v469_v14 = vmax.f32 %v370_v8, %v371_v9  ;;  %v375_v17 = vld [vmem:[%s2093_s25 + $0x58] sm:$0xff]  ;;  %v372_v18 = vld [vmem:[%s2093_s25 + $0x40] sm:$0xff]  ;;  %v373_v19 = vld [vmem:[%s2093_s25 + $0x48] sm:$0xff] }
  0x1d   : > { %v466_v15 = vmax.f32 %v368_v10, %v369_v11  ;;  %v411_v20 = vadd.f32 %v375_v17, %v374_v16  ;;  %v408_v21 = vadd.f32 %v373_v19, %v372_v18  ;;  %v475_v22 = vmax.f32 %v374_v16, %v375_v17  ;;  %v378_v24 = vld [vmem:[%s2093_s25 + $0x70] sm:$0xff]  ;;  %v379_v25 = vld [vmem:[%s2093_s25 + $0x78] sm:$0xff]  ;;  %v376_v26 = vld [vmem:[%s2093_s25 + $0x60] sm:$0xff]  ;;  %1885 = vset.pattern.permute.xlu1 %v1982_v2 }
  0x1e   : > { %v472_v23 = vmax.f32 %v372_v18, %v373_v19  ;;  %v377_v27 = vld [vmem:[%s2093_s25 + $0x68] sm:$0xff]  ;;  %v417_v28 = vadd.f32 %v379_v25, %v378_v24  ;;  %v481_v30 = vmax.f32 %v378_v24, %v379_v25  ;;  %v382_v32 = vld [vmem:[%s2093_s25 + $0x90] sm:$0xff]  ;;  %v383_v33 = vld [vmem:[%s2093_s25 + $0x98] sm:$0xff]  ;;  %1884 = vset.pattern.permute.xlu0 %v1982_v2 }
  0x1f   : > { %v414_v29 = vadd.f32 %v377_v27, %v376_v26  ;;  %v478_v31 = vmax.f32 %v376_v26, %v377_v27  ;;  %v380_v34 = vld [vmem:[%s2093_s25 + $0x80] sm:$0xff]  ;;  %v381_v35 = vld [vmem:[%s2093_s25 + $0x88] sm:$0xff]  ;;  %v423_v36 = vadd.f32 %v383_v33, %v382_v32  ;;  %v487_v38 = vmax.f32 %v382_v32, %v383_v33  ;;  %v386_v40 = vld [vmem:[%s2093_s25 + $0xb0] sm:$0xff] }
  0x20   : > { %464 = vmax.xlane.f32.xlu1 %v463_v6  ;;  %400 = vadd.xlane.f32.xlu0 %v399_v7  ;;  %v420_v37 = vadd.f32 %v381_v35, %v380_v34  ;;  %v484_v39 = vmax.f32 %v380_v34, %v381_v35  ;;  %v387_v41 = vld [vmem:[%s2093_s25 + $0xb8] sm:$0xff]  ;;  %v384_v42 = vld [vmem:[%s2093_s25 + $0xa0] sm:$0xff]  ;;  %v385_v43 = vld [vmem:[%s2093_s25 + $0xa8] sm:$0xff] }
  0x21   : > { %v429_v44 = vadd.f32 %v387_v41, %v386_v40  ;;  %v426_v45 = vadd.f32 %v385_v43, %v384_v42  ;;  %v493_v46 = vmax.f32 %v386_v40, %v387_v41  ;;  %v490_v47 = vmax.f32 %v384_v42, %v385_v43  ;;  %v390_v48 = vld [vmem:[%s2093_s25 + $0xd0] sm:$0xff]  ;;  %v391_v49 = vld [vmem:[%s2093_s25 + $0xd8] sm:$0xff]  ;;  %v388_v50 = vld [vmem:[%s2093_s25 + $0xc0] sm:$0xff] }
  0x22   : > { %v389_v51 = vld [vmem:[%s2093_s25 + $0xc8] sm:$0xff]  ;;  %v435_v52 = vadd.f32 %v391_v49, %v390_v48  ;;  %v499_v54 = vmax.f32 %v390_v48, %v391_v49  ;;  %v394_v56 = vld [vmem:[%s2093_s25 + $0xf0] sm:$0xff]  ;;  %v395_v57 = vld [vmem:[%s2093_s25 + $0xf8] sm:$0xff] }
  0x23   : > { %v432_v53 = vadd.f32 %v389_v51, %v388_v50  ;;  %v496_v55 = vmax.f32 %v388_v50, %v389_v51  ;;  %v392_v58 = vld [vmem:[%s2093_s25 + $0xe0] sm:$0xff]  ;;  %v393_v59 = vld [vmem:[%s2093_s25 + $0xe8] sm:$0xff]  ;;  %v441_v60 = vadd.f32 %v395_v57, %v394_v56  ;;  %v505_v62 = vmax.f32 %v394_v56, %v395_v57  ;;  %v561_v3 = vld [vmem:[%s2717_s2 + $0x10] sm:$0xff] }
  0x24   : > { %406 = vadd.xlane.f32.xlu1 %v405_v12  ;;  %403 = vadd.xlane.f32.xlu0 %v402_v13  ;;  %v438_v61 = vadd.f32 %v393_v59, %v392_v58  ;;  %v502_v63 = vmax.f32 %v392_v58, %v393_v59  ;;  %v543_v0 = vld [vmem:[%s2716_s1] sm:$0xff]  ;;  %v560_v1 = vld [vmem:[%s2717_s2 + $0x8] sm:$0xff]  ;;  %v562_v6 = vld [vmem:[%s2717_s2 + $0x18] sm:$0xff] }
  0x25   : > { %1697 = vmatprep.mubr.f32.mxu0 %v543_v0  ;;  %v559_v4 = vld [vmem:[%s2717_s2] sm:$0xff]  ;;  %v568_v5 = vld [vmem:[%s2717_s2 + $0x48] sm:$0xff]  ;;  %v570_v7 = vld [vmem:[%s2717_s2 + $0x58] sm:$0xff] }
  0x26   : > { %v563_v8 = vld [vmem:[%s2717_s2 + $0x20] sm:$0xff]  ;;  %v572_v9 = vld [vmem:[%s2717_s2 + $0x68] sm:$0xff]  ;;  %v574_v11 = vld [vmem:[%s2717_s2 + $0x78] sm:$0xff] }
  0x27   : > { %v564_v10 = vld [vmem:[%s2717_s2 + $0x28] sm:$0xff]  ;;  %v565_v12 = vld [vmem:[%s2717_s2 + $0x30] sm:$0xff]  ;;  %v566_v13 = vld [vmem:[%s2717_s2 + $0x38] sm:$0xff] }
  0x28   : > { %470 = vmax.xlane.f32.xlu1 %v469_v14  ;;  %467 = vmax.xlane.f32.xlu0 %v466_v15  ;;  %v567_v14 = vld [vmem:[%s2717_s2 + $0x40] sm:$0xff]  ;;  %v508_v15 = vlaneseq  ;;  %v569_v16 = vld [vmem:[%s2717_s2 + $0x50] sm:$0xff] }
  0x29   : > { %v573_v27 = vld [vmem:[%s2717_s2 + $0x70] sm:$0xff] }
  0x2a   : > { %v2172_v19 = vand.u32 127, %v508_v15 }
  0x2c   : > { %412 = vadd.xlane.f32.xlu1 %v411_v20  ;;  %409 = vadd.xlane.f32.xlu0 %v408_v21  ;;  %v571_v21 = vld [vmem:[%s2717_s2 + $0x60] sm:$0xff]  ;;  %vm510_vm0 = vcmp.eq.s32.totalorder %v2172_v19, 0  ;;  %vm1234_vm2 = vcmp.eq.s32.totalorder %v2172_v19, 1 }
  0x30   : > { %476 = vmax.xlane.f32.xlu1 %v475_v22  ;;  %473 = vmax.xlane.f32.xlu0 %v472_v23 }
  0x34   : > { %418 = vadd.xlane.f32.xlu1 %v417_v28  ;;  %415 = vadd.xlane.f32.xlu0 %v414_v29 }
  0x38   : > { %482 = vmax.xlane.f32.xlu1 %v481_v30  ;;  %479 = vmax.xlane.f32.xlu0 %v478_v31 }
  0x3c   : > { %424 = vadd.xlane.f32.xlu1 %v423_v36  ;;  %421 = vadd.xlane.f32.xlu0 %v420_v37 }
  0x40   : > { %488 = vmax.xlane.f32.xlu1 %v487_v38  ;;  %485 = vmax.xlane.f32.xlu0 %v484_v39 }
  0x44   : > { %430 = vadd.xlane.f32.xlu1 %v429_v44  ;;  %427 = vadd.xlane.f32.xlu0 %v426_v45 }
  0x48   : > { %494 = vmax.xlane.f32.xlu1 %v493_v46  ;;  %491 = vmax.xlane.f32.xlu0 %v490_v47 }
  0x4c   : > { %436 = vadd.xlane.f32.xlu1 %v435_v52  ;;  %433 = vadd.xlane.f32.xlu0 %v432_v53 }
  0x50   : > { %500 = vmax.xlane.f32.xlu1 %v499_v54  ;;  %497 = vmax.xlane.f32.xlu0 %v496_v55 }
  0x54   : > { %442 = vadd.xlane.f32.xlu1 %v441_v60  ;;  %439 = vadd.xlane.f32.xlu0 %v438_v61 }
  0x58   : > { %506 = vmax.xlane.f32.xlu1 %v505_v62  ;;  %503 = vmax.xlane.f32.xlu0 %v502_v63 }
  0x69   : > { %582 = vperm.xlu1 %1885, %v560_v1  }
  0x6d   : > { %587 = vperm.xlu1 %1885, %v561_v3  }
  0x6e   : > { %577 = vperm.xlu0 %1884, %v559_v4  }
  0x71   : > { %592 = vperm.xlu1 %1885, %v562_v6  }
  0x72   : > { %622 = vperm.xlu0 %1884, %v568_v5  }
  0x75   : > { %597 = vperm.xlu1 %1885, %v563_v8  }
  0x76   : > { %632 = vperm.xlu0 %1884, %v570_v7  }
  0x79   : > { %602 = vperm.xlu1 %1885, %v564_v10  }
  0x7a   : > { %642 = vperm.xlu0 %1884, %v572_v9  }
  0x7d   : > { %607 = vperm.xlu1 %1885, %v565_v12  }
  0x7e   : > { %652 = vperm.xlu0 %1884, %v574_v11  }
  0x81   : > { %612 = vperm.xlu1 %1885, %v566_v13  }
  0x85   : > { %617 = vperm.xlu1 %1885, %v567_v14  }
  0x89   : > { %627 = vperm.xlu1 %1885, %v569_v16  }
  0x8d   : > { %637 = vperm.xlu1 %1885, %v571_v21  }
  0x91   : > { %647 = vperm.xlu1 %1885, %v573_v27  }
  0xa9   : > { %v462_v17 = vpop.xlane.xlu1 %461  ;;  %v398_v18 = vpop.xlane.xlu0 %397 }
  0xaa   : > { %v444_v20 = vmul.f32 0.00390625, %v398_v18 }
  0xac   : > { %v511_v25 = vsel %vm510_vm0, %v444_v20, %v462_v17 }
  0xad   : > { %v465_v22 = vpop.xlane.xlu1 %464  ;;  %v401_v23 = vpop.xlane.xlu0 %400 }
  0xae   : > { %v445_v24 = vmul.f32 0.00390625, %v401_v23 }
  0xb0   : > { %v512_v26 = vsel %vm510_vm0, %v445_v24, %v465_v22 }
  0xb1   : > { %v407_v28 = vpop.xlane.xlu1 %406  ;;  %v404_v29 = vpop.xlane.xlu0 %403  ;;  %v1777_v30 = vpack.c.bf16 %v512_v26, %v511_v25 }
  0xb2   : > { %v447_v31 = vmul.f32 0.00390625, %v407_v28  ;;  %v446_v32 = vmul.f32 0.00390625, %v404_v29  ;;  %v544_v29 = vld [vmem:[%s2716_s1 + $0x8] sm:$0xff] }
  0xb3   : > { %1778 = vmatprep.subr.bf16.mxu0 %v1777_v30 }
  0xb4   : > { %1780 = vmatpush3.bf16.msra.mxu0 %v1777_v30  ;;  %v545_v30 = vld [vmem:[%s2716_s1 + $0x10] sm:$0xff] }
  0xb5   : > { %v471_v33 = vpop.xlane.xlu1 %470  ;;  %v468_v34 = vpop.xlane.xlu0 %467 }
  0xb6   : > { %v514_v35 = vsel %vm510_vm0, %v447_v31, %v471_v33  ;;  %v513_v36 = vsel %vm510_vm0, %v446_v32, %v468_v34  ;;  %v546_v31 = vld [vmem:[%s2716_s1 + $0x18] sm:$0xff]  ;;  %v547_v32 = vld [vmem:[%s2716_s1 + $0x20] sm:$0xff]  ;;  %v548_v33 = vld [vmem:[%s2716_s1 + $0x28] sm:$0xff] }
  0xb7   : > { %v1781_v37 = vpack.c.bf16 %v514_v35, %v513_v36  ;;  %v549_v34 = vld [vmem:[%s2716_s1 + $0x30] sm:$0xff]  ;;  %v550_v35 = vld [vmem:[%s2716_s1 + $0x38] sm:$0xff]  ;;  %v551_v36 = vld [vmem:[%s2716_s1 + $0x40] sm:$0xff] }
  0xb9   : > { %v413_v38 = vpop.xlane.xlu1 %412  ;;  %1782 = vmatprep.subr.bf16.mxu0 %v1781_v37  ;;  %v410_v39 = vpop.xlane.xlu0 %409 }
  0xba   : > { %1784 = vmatpush3.bf16.msra.mxu0 %v1781_v37  ;;  %v449_v40 = vmul.f32 0.00390625, %v413_v38  ;;  %v448_v41 = vmul.f32 0.00390625, %v410_v39  ;;  %v552_v37 = vld [vmem:[%s2716_s1 + $0x48] sm:$0xff]  ;;  %v553_v38 = vld [vmem:[%s2716_s1 + $0x50] sm:$0xff]  ;;  %v554_v39 = vld [vmem:[%s2716_s1 + $0x58] sm:$0xff] }
  0xbd   : > { %v477_v42 = vpop.xlane.xlu1 %476  ;;  %v474_v43 = vpop.xlane.xlu0 %473 }
  0xbe   : > { %v516_v44 = vsel %vm510_vm0, %v449_v40, %v477_v42  ;;  %v515_v45 = vsel %vm510_vm0, %v448_v41, %v474_v43  ;;  %v555_v40 = vld [vmem:[%s2716_s1 + $0x60] sm:$0xff]  ;;  %v556_v41 = vld [vmem:[%s2716_s1 + $0x68] sm:$0xff]  ;;  %v557_v42 = vld [vmem:[%s2716_s1 + $0x70] sm:$0xff] }
  0xbf   : > { %v1785_v46 = vpack.c.bf16 %v516_v44, %v515_v45  ;;  %v558_v43 = vld [vmem:[%s2716_s1 + $0x78] sm:$0xff] }
  0xc1   : > { %v419_v47 = vpop.xlane.xlu1 %418  ;;  %1786 = vmatprep.subr.bf16.mxu0 %v1785_v46  ;;  %v416_v48 = vpop.xlane.xlu0 %415 }
  0xc2   : > { %1788 = vmatpush3.bf16.msra.mxu0 %v1785_v46  ;;  %v451_v49 = vmul.f32 0.00390625, %v419_v47  ;;  %v450_v50 = vmul.f32 0.00390625, %v416_v48 }
  0xc5   : > { %v483_v51 = vpop.xlane.xlu1 %482  ;;  %v480_v52 = vpop.xlane.xlu0 %479 }
  0xc6   : > { %v518_v53 = vsel %vm510_vm0, %v451_v49, %v483_v51  ;;  %v517_v54 = vsel %vm510_vm0, %v450_v50, %v480_v52 }
  0xc7   : > { %v1789_v55 = vpack.c.bf16 %v518_v53, %v517_v54 }
  0xc9   : > { %v425_v56 = vpop.xlane.xlu1 %424  ;;  %1790 = vmatprep.subr.bf16.mxu0 %v1789_v55  ;;  %v422_v57 = vpop.xlane.xlu0 %421 }
  0xca   : > { %1792 = vmatpush3.bf16.msra.mxu0 %v1789_v55  ;;  %v453_v58 = vmul.f32 0.00390625, %v425_v56  ;;  %v452_v59 = vmul.f32 0.00390625, %v422_v57 }
  0xcd   : > { %v489_v60 = vpop.xlane.xlu1 %488  ;;  %v486_v61 = vpop.xlane.xlu0 %485 }
  0xce   : > { %v520_v62 = vsel %vm510_vm0, %v453_v58, %v489_v60  ;;  %v519_v63 = vsel %vm510_vm0, %v452_v59, %v486_v61 }
  0xcf   : > { %v1793_v0 = vpack.c.bf16 %v520_v62, %v519_v63 }
  0xd1   : > { %v431_v1 = vpop.xlane.xlu1 %430  ;;  %1794 = vmatprep.subr.bf16.mxu0 %v1793_v0  ;;  %v428_v2 = vpop.xlane.xlu0 %427 }
  0xd2   : > { %1796 = vmatpush3.bf16.msra.mxu0 %v1793_v0  ;;  %v455_v3 = vmul.f32 0.00390625, %v431_v1  ;;  %v454_v4 = vmul.f32 0.00390625, %v428_v2 }
  0xd5   : > { %v495_v5 = vpop.xlane.xlu1 %494  ;;  %v492_v6 = vpop.xlane.xlu0 %491 }
  0xd6   : > { %v522_v7 = vsel %vm510_vm0, %v455_v3, %v495_v5  ;;  %v521_v8 = vsel %vm510_vm0, %v454_v4, %v492_v6 }
  0xd7   : > { %v1797_v9 = vpack.c.bf16 %v522_v7, %v521_v8 }
  0xd9   : > { %v437_v10 = vpop.xlane.xlu1 %436  ;;  %1798 = vmatprep.subr.bf16.mxu0 %v1797_v9  ;;  %v434_v11 = vpop.xlane.xlu0 %433 }
  0xda   : > { %1800 = vmatpush3.bf16.msra.mxu0 %v1797_v9  ;;  %v457_v12 = vmul.f32 0.00390625, %v437_v10  ;;  %v456_v13 = vmul.f32 0.00390625, %v434_v11 }
  0xdd   : > { %v501_v14 = vpop.xlane.xlu1 %500  ;;  %v498_v15 = vpop.xlane.xlu0 %497 }
  0xde   : > { %v524_v16 = vsel %vm510_vm0, %v457_v12, %v501_v14  ;;  %v523_v17 = vsel %vm510_vm0, %v456_v13, %v498_v15 }
  0xdf   : > { %v1801_v18 = vpack.c.bf16 %v524_v16, %v523_v17 }
  0xe1   : > { %v443_v20 = vpop.xlane.xlu1 %442  ;;  %1802 = vmatprep.subr.bf16.mxu0 %v1801_v18  ;;  %v440_v21 = vpop.xlane.xlu0 %439 }
  0xe2   : > { %1804 = vmatpush3.bf16.msra.mxu0 %v1801_v18  ;;  %v459_v22 = vmul.f32 0.00390625, %v443_v20  ;;  %v458_v23 = vmul.f32 0.00390625, %v440_v21 }
  0xe5   : > { %v507_v24 = vpop.xlane.xlu1 %506  ;;  %v504_v25 = vpop.xlane.xlu0 %503 }
  0xe6   : > { %v526_v26 = vsel %vm510_vm0, %v459_v22, %v507_v24  ;;  %v525_v27 = vsel %vm510_vm0, %v458_v23, %v504_v25 }
  0xe7   : > { %v1805_v28 = vpack.c.bf16 %v526_v26, %v525_v27 }
  0xe9   : > { %1806 = vmatprep.subr.bf16.mxu0 %v1805_v28  ;;  %v583_v44 = vpop.permute.xlu1 %582 }
  0xea   : > { %1808 = vmatpush3.bf16.msra.mxu0 %v1805_v28 }
  0xed   : > { %1698 = vmatmul.mubr.f32.vlgmr.msra.gmra.mrb[0].mxu0 %v544_v29  ;;  %v588_v45 = vpop.permute.xlu1 %587  ;;  %v578_v51 = vpop.permute.xlu0 %577 }
  0xee   : > { %1700 = vmatprep.mubr.f32.mxu0 %v545_v30 }
  0xf1   : > { %1701 = vmatmul.mubr.f32.gmra.mrb[2].mxu0 %v546_v31  ;;  %v593_v46 = vpop.permute.xlu1 %592  ;;  %v623_v6 = vpop.permute.xlu0 %622 }
  0xf2   : > { %1703 = vmatprep.mubr.f32.mxu0 %v547_v32 }
  0xf5   : > { %1704 = vmatmul.mubr.f32.gmra.mrb[4].mxu0 %v548_v33  ;;  %v598_v47 = vpop.permute.xlu1 %597  ;;  %v633_v20 = vpop.permute.xlu0 %632 }
  0xf6   : > { %1706 = vmatprep.mubr.f32.mxu0 %v549_v34 }
  0xf9   : > { %1707 = vmatmul.mubr.f32.gmra.mrb[6].mxu0 %v550_v35  ;;  %v603_v48 = vpop.permute.xlu1 %602  ;;  %v643_v35 = vpop.permute.xlu0 %642 }
  0xfa   : > { %1709 = vmatprep.mubr.f32.mxu0 %v551_v36 }
  0xfd   : > { %1710 = vmatmul.mubr.f32.gmra.mrb[8].mxu0 %v552_v37  ;;  %v608_v49 = vpop.permute.xlu1 %607 }
  0xfe   : > { %1712 = vmatprep.mubr.f32.mxu0 %v553_v38 }
 0x101   : > { %1713 = vmatmul.mubr.f32.gmra.mrb[10].mxu0 %v554_v39  ;;  %v613_v58 = vpop.permute.xlu1 %612 }
 0x102   : > { %1715 = vmatprep.mubr.f32.mxu0 %v555_v40 }
 0x105   : > { %1716 = vmatmul.mubr.f32.gmra.mrb[12].mxu0 %v556_v41  ;;  %v618_v9 = vpop.permute.xlu1 %617 }
 0x106   : > { %1718 = vmatprep.mubr.f32.mxu0 %v557_v42 }
 0x109   : > { %1719 = vmatmul.mubr.f32.gmra.mrb[14].mxu0 %v558_v43  ;;  %v628_v23 = vpop.permute.xlu1 %627 }
 0x10d   : > { %v638_v38 = vpop.permute.xlu1 %637 }
 0x1c0   : > { %v1699_v50 = vpop.f32.mrb[0].mxu0 }
 0x1c1   : > { %v727_v52 = vadd.f32 %v1699_v50, %v583_v44  ;;  %v721_v53 = vpop.f32.mrb[1].mxu0 }
 0x1c2   : > { %v722_v54 = vadd.f32 %v721_v53, %v578_v51  ;;  %v648_v51 = vpop.permute.xlu1 %647 }
 0x1c3   : > { %v801_v55 = vmax.f32 %v727_v52, 0.0 }
 0x1c4   : > { %v800_v56 = vmax.f32 %v722_v54, 0.0  ;;  %v1702_v57 = vpop.f32.mrb[2].mxu0 }
 0x1c5   : > { %v737_v59 = vadd.f32 %v1702_v57, %v593_v46  ;;  %v731_v60 = vpop.f32.mrb[3].mxu0  ;;  %v820_v61 = vsel %vm816_vm1, %v801_v55, 0.0 }
 0x1c6   : > { %v732_v62 = vadd.f32 %v731_v60, %v588_v45  ;;  %821 = vadd.xlane.f32.xlu0 %v820_v61  ;;  %v817_v63 = vsel %vm816_vm1, %v800_v56, 0.0  ;;  %v865_v61 = vld [vmem:[%s2718_s3] sm:$0xff] }
 0x1c7   : > { %v803_v0 = vmax.f32 %v737_v59, 0.0  ;;  %818 = vadd.xlane.f32.xlu1 %v817_v63  ;;  %1753 = vmatprep.mubr.f32.mxu1 %v865_v61 }
 0x1c8   : > { %v802_v1 = vmax.f32 %v732_v62, 0.0  ;;  %v1705_v2 = vpop.f32.mrb[4].mxu0 }
 0x1c9   : > { %v747_v3 = vadd.f32 %v1705_v2, %v603_v48  ;;  %v741_v4 = vpop.f32.mrb[5].mxu0  ;;  %v826_v5 = vsel %vm816_vm1, %v803_v0, 0.0  ;;  %v653_v48 = vpop.permute.xlu0 %652 }
 0x1ca   : > { %v742_v7 = vadd.f32 %v741_v4, %v598_v47  ;;  %v823_v8 = vsel %vm816_vm1, %v802_v1, 0.0 }
 0x1cb   : > { %v805_v10 = vmax.f32 %v747_v3, 0.0  ;;  %824 = vadd.xlane.f32.xlu0 %v823_v8  ;;  %827 = vadd.xlane.f32.xlu1 %v826_v5 }
 0x1cc   : > { %v804_v11 = vmax.f32 %v742_v7, 0.0  ;;  %v1708_v12 = vpop.f32.mrb[6].mxu0 }
 0x1cd   : > { %v757_v13 = vadd.f32 %v1708_v12, %v613_v58  ;;  %v751_v14 = vpop.f32.mrb[7].mxu0  ;;  %v832_v15 = vsel %vm816_vm1, %v805_v10, 0.0 }
 0x1ce   : > { %v752_v16 = vadd.f32 %v751_v14, %v608_v49  ;;  %v829_v17 = vsel %vm816_vm1, %v804_v11, 0.0 }
 0x1cf   : > { %v807_v18 = vmax.f32 %v757_v13, 0.0  ;;  %830 = vadd.xlane.f32.xlu0 %v829_v17  ;;  %833 = vadd.xlane.f32.xlu1 %v832_v15 }
 0x1d0   : > { %v806_v21 = vmax.f32 %v752_v16, 0.0  ;;  %v1711_v22 = vpop.f32.mrb[8].mxu0 }
 0x1d1   : > { %v767_v24 = vadd.f32 %v1711_v22, %v623_v6  ;;  %v761_v25 = vpop.f32.mrb[9].mxu0  ;;  %v838_v26 = vsel %vm816_vm1, %v807_v18, 0.0 }
 0x1d2   : > { %v762_v27 = vadd.f32 %v761_v25, %v618_v9  ;;  %v835_v28 = vsel %vm816_vm1, %v806_v21, 0.0  ;;  %v868_v25 = vld [vmem:[%s2718_s3 + $0x18] sm:$0xff] }
 0x1d3   : > { %v809_v29 = vmax.f32 %v767_v24, 0.0  ;;  %836 = vadd.xlane.f32.xlu0 %v835_v28  ;;  %839 = vadd.xlane.f32.xlu1 %v838_v26  ;;  %v867_v24 = vld [vmem:[%s2718_s3 + $0x10] sm:$0xff]  ;;  %v869_v26 = vld [vmem:[%s2718_s3 + $0x20] sm:$0xff] }
 0x1d4   : > { %v808_v30 = vmax.f32 %v762_v27, 0.0  ;;  %v1714_v31 = vpop.f32.mrb[10].mxu0  ;;  %v870_v27 = vld [vmem:[%s2718_s3 + $0x28] sm:$0xff]  ;;  %v871_v28 = vld [vmem:[%s2718_s3 + $0x30] sm:$0xff] }
 0x1d5   : > { %v777_v32 = vadd.f32 %v1714_v31, %v633_v20  ;;  %v771_v33 = vpop.f32.mrb[11].mxu0  ;;  %v844_v34 = vsel %vm816_vm1, %v809_v29, 0.0  ;;  %v872_v29 = vld [vmem:[%s2718_s3 + $0x38] sm:$0xff]  ;;  %v874_v31 = vld [vmem:[%s2718_s3 + $0x48] sm:$0xff] }
 0x1d6   : > { %v772_v36 = vadd.f32 %v771_v33, %v628_v23  ;;  %v841_v37 = vsel %vm816_vm1, %v808_v30, 0.0  ;;  %v866_v23 = vld [vmem:[%s2718_s3 + $0x8] sm:$0xff]  ;;  %v873_v30 = vld [vmem:[%s2718_s3 + $0x40] sm:$0xff]  ;;  %v876_v33 = vld [vmem:[%s2718_s3 + $0x58] sm:$0xff] }
 0x1d7   : > { %v811_v39 = vmax.f32 %v777_v32, 0.0  ;;  %842 = vadd.xlane.f32.xlu0 %v841_v37  ;;  %845 = vadd.xlane.f32.xlu1 %v844_v34  ;;  %v875_v32 = vld [vmem:[%s2718_s3 + $0x50] sm:$0xff]  ;;  %v877_v34 = vld [vmem:[%s2718_s3 + $0x60] sm:$0xff]  ;;  %v880_v37 = vld [vmem:[%s2718_s3 + $0x78] sm:$0xff] }
 0x1d8   : > { %v810_v40 = vmax.f32 %v772_v36, 0.0  ;;  %v1717_v41 = vpop.f32.mrb[12].mxu0  ;;  %v879_v36 = vld [vmem:[%s2718_s3 + $0x70] sm:$0xff] }
 0x1d9   : > { %v787_v42 = vadd.f32 %v1717_v41, %v643_v35  ;;  %v781_v43 = vpop.f32.mrb[13].mxu0  ;;  %v850_v44 = vsel %vm816_vm1, %v811_v39, 0.0  ;;  %v878_v35 = vld [vmem:[%s2718_s3 + $0x68] sm:$0xff]  ;;  %v881_v39 = vld [vmem:[%s2719_s4] sm:$0xff] }
 0x1da   : > { %v782_v45 = vadd.f32 %v781_v43, %v638_v38  ;;  %v847_v46 = vsel %vm816_vm1, %v810_v40, 0.0  ;;  %v882_v38 = vld [vmem:[%s2719_s4 + $0x8] sm:$0xff] }
 0x1db   : > { %v813_v47 = vmax.f32 %v787_v42, 0.0  ;;  %848 = vadd.xlane.f32.xlu0 %v847_v46  ;;  %851 = vadd.xlane.f32.xlu1 %v850_v44  ;;  %v884_v44 = vld [vmem:[%s2719_s4 + $0x18] sm:$0xff]  ;;  %v883_v46 = vld [vmem:[%s2719_s4 + $0x10] sm:$0xff] }
 0x1dc   : > { %v812_v49 = vmax.f32 %v782_v45, 0.0  ;;  %v1720_v50 = vpop.f32.mrb[14].mxu0 }
 0x1dd   : > { %v797_v52 = vadd.f32 %v1720_v50, %v653_v48  ;;  %v791_v53 = vpop.f32.mrb[15].mxu0  ;;  %v856_v54 = vsel %vm816_vm1, %v813_v47, 0.0 }
 0x1de   : > { %v792_v55 = vadd.f32 %v791_v53, %v648_v51  ;;  %v853_v56 = vsel %vm816_vm1, %v812_v49, 0.0 }
 0x1df   : > { %v815_v57 = vmax.f32 %v797_v52, 0.0  ;;  %854 = vadd.xlane.f32.xlu0 %v853_v56  ;;  %857 = vadd.xlane.f32.xlu1 %v856_v54  ;;  %v886_v54 = vld [vmem:[%s2719_s4 + $0x28] sm:$0xff]  ;;  %v885_v56 = vld [vmem:[%s2719_s4 + $0x20] sm:$0xff] }
 0x1e0   : > { %v814_v58 = vmax.f32 %v792_v55, 0.0 }
 0x1e1   : > { %v862_v59 = vsel %vm816_vm1, %v815_v57, 0.0 }
 0x1e2   : > { %v859_v60 = vsel %vm816_vm1, %v814_v58, 0.0 }
 0x1e3   : > { %860 = vadd.xlane.f32.xlu0 %v859_v60  ;;  %863 = vadd.xlane.f32.xlu1 %v862_v59 }
 0x253   : > { %v822_v62 = vpop.xlane.xlu0 %821 }
 0x254   : > { %v819_v63 = vpop.xlane.xlu1 %818 }
 0x255   : > { %v1809_v0 = vpack.c.bf16 %v822_v62, %v819_v63 }
 0x257   : > { %1810 = vmatprep.subr.bf16.mxu1 %v1809_v0 }
 0x258   : > { %v828_v1 = vpop.xlane.xlu1 %827  ;;  %1812 = vmatpush3.bf16.msra.mxu1 %v1809_v0  ;;  %v825_v2 = vpop.xlane.xlu0 %824  ;;  %v888_v0 = vld [vmem:[%s2719_s4 + $0x38] sm:$0xff] }
 0x259   : > { %v1813_v3 = vpack.c.bf16 %v828_v1, %v825_v2  ;;  %v887_v2 = vld [vmem:[%s2719_s4 + $0x30] sm:$0xff] }
 0x25b   : > { %1814 = vmatprep.subr.bf16.mxu1 %v1813_v3 }
 0x25c   : > { %v834_v4 = vpop.xlane.xlu1 %833  ;;  %1816 = vmatpush3.bf16.msra.mxu1 %v1813_v3  ;;  %v831_v5 = vpop.xlane.xlu0 %830 }
 0x25d   : > { %v1817_v6 = vpack.c.bf16 %v834_v4, %v831_v5 }
 0x25f   : > { %1818 = vmatprep.subr.bf16.mxu1 %v1817_v6 }
 0x260   : > { %v840_v7 = vpop.xlane.xlu1 %839  ;;  %1820 = vmatpush3.bf16.msra.mxu1 %v1817_v6  ;;  %v837_v8 = vpop.xlane.xlu0 %836 }
 0x261   : > { %v1821_v9 = vpack.c.bf16 %v840_v7, %v837_v8 }
 0x263   : > { %1822 = vmatprep.subr.bf16.mxu1 %v1821_v9 }
 0x264   : > { %v846_v10 = vpop.xlane.xlu1 %845  ;;  %1824 = vmatpush3.bf16.msra.mxu1 %v1821_v9  ;;  %v843_v11 = vpop.xlane.xlu0 %842 }
 0x265   : > { %v1825_v12 = vpack.c.bf16 %v846_v10, %v843_v11  ;;  %v890_v10 = vld [vmem:[%s2719_s4 + $0x48] sm:$0xff] }
 0x267   : > { %1826 = vmatprep.subr.bf16.mxu1 %v1825_v12 }
 0x268   : > { %v852_v13 = vpop.xlane.xlu1 %851  ;;  %1828 = vmatpush3.bf16.msra.mxu1 %v1825_v12  ;;  %v849_v14 = vpop.xlane.xlu0 %848  ;;  %v889_v12 = vld [vmem:[%s2719_s4 + $0x40] sm:$0xff] }
 0x269   : > { %v1829_v15 = vpack.c.bf16 %v852_v13, %v849_v14 }
 0x26b   : > { %1830 = vmatprep.subr.bf16.mxu1 %v1829_v15 }
 0x26c   : > { %v858_v16 = vpop.xlane.xlu1 %857  ;;  %1832 = vmatpush3.bf16.msra.mxu1 %v1829_v15  ;;  %v855_v17 = vpop.xlane.xlu0 %854 }
 0x26d   : > { %v1833_v18 = vpack.c.bf16 %v858_v16, %v855_v17 }
 0x26f   : > { %1834 = vmatprep.subr.bf16.mxu1 %v1833_v18 }
 0x270   : > { %v864_v20 = vpop.xlane.xlu1 %863  ;;  %1836 = vmatpush3.bf16.msra.mxu1 %v1833_v18  ;;  %v861_v21 = vpop.xlane.xlu0 %860 }
 0x271   : > { %v1837_v22 = vpack.c.bf16 %v864_v20, %v861_v21  ;;  %v892_v21 = vld [vmem:[%s2719_s4 + $0x58] sm:$0xff] }
 0x273   : > { %1838 = vmatprep.subr.bf16.mxu1 %v1837_v22 }
 0x274   : > { %1840 = vmatpush3.bf16.msra.mxu1 %v1837_v22 }
 0x277   : > { %1754 = vmatmul.mubr.f32.vlgmr.msra.gmra.mrb[0].mxu1 %v866_v23  ;;  %v891_v23 = vld [vmem:[%s2719_s4 + $0x50] sm:$0xff] }
 0x278   : > { %1756 = vmatprep.mubr.f32.mxu1 %v867_v24 }
 0x27b   : > { %1757 = vmatmul.mubr.f32.gmra.mrb[2].mxu1 %v868_v25 }
 0x27c   : > { %1759 = vmatprep.mubr.f32.mxu1 %v869_v26 }
 0x27f   : > { %1760 = vmatmul.mubr.f32.gmra.mrb[4].mxu1 %v870_v27 }
 0x280   : > { %1762 = vmatprep.mubr.f32.mxu1 %v871_v28 }
 0x283   : > { %1763 = vmatmul.mubr.f32.gmra.mrb[6].mxu1 %v872_v29 }
 0x284   : > { %1765 = vmatprep.mubr.f32.mxu1 %v873_v30 }
 0x287   : > { %1766 = vmatmul.mubr.f32.gmra.mrb[8].mxu1 %v874_v31  ;;  %v894_v31 = vld [vmem:[%s2719_s4 + $0x68] sm:$0xff] }
 0x288   : > { %1768 = vmatprep.mubr.f32.mxu1 %v875_v32 }
 0x28b   : > { %1769 = vmatmul.mubr.f32.gmra.mrb[10].mxu1 %v876_v33  ;;  %v893_v33 = vld [vmem:[%s2719_s4 + $0x60] sm:$0xff] }
 0x28c   : > { %1771 = vmatprep.mubr.f32.mxu1 %v877_v34 }
 0x28f   : > { %1772 = vmatmul.mubr.f32.gmra.mrb[12].mxu1 %v878_v35 }
 0x290   : > { %1774 = vmatprep.mubr.f32.mxu1 %v879_v36 }
 0x293   : > { %1775 = vmatmul.mubr.f32.gmra.mrb[14].mxu1 %v880_v37 }
 0x34a   : > { %v1755_v40 = vpop.f32.mrb[0].mxu1 }
 0x34b   : > { %v969_v41 = vadd.f32 %v1755_v40, %v882_v38  ;;  %v963_v42 = vpop.f32.mrb[1].mxu1 }
 0x34c   : > { %v964_v43 = vadd.f32 %v963_v42, %v881_v39 }
 0x34d   : > { %v1043_v45 = vmax.f32 %v969_v41, 0.0  ;;  %v896_v41 = vld [vmem:[%s2719_s4 + $0x78] sm:$0xff] }
 0x34e   : > { %v1042_v47 = vmax.f32 %v964_v43, 0.0  ;;  %v1758_v48 = vpop.f32.mrb[2].mxu1  ;;  %v895_v43 = vld [vmem:[%s2719_s4 + $0x70] sm:$0xff] }
 0x34f   : > { %v1059_v49 = vmin.f32 %v1043_v45, 6.0  ;;  %v979_v50 = vadd.f32 %v1758_v48, %v884_v44  ;;  %v973_v51 = vpop.f32.mrb[3].mxu1 }
 0x350   : > { %v1058_v52 = vmin.f32 %v1042_v47, 6.0  ;;  %v974_v53 = vadd.f32 %v973_v51, %v883_v46 }
 0x351   : > { %v1045_v55 = vmax.f32 %v979_v50, 0.0  ;;  %1097 = vperm.xlu1 %1885, %v1059_v49  }
 0x352   : > { %v1044_v57 = vmax.f32 %v974_v53, 0.0  ;;  %v1761_v58 = vpop.f32.mrb[4].mxu1  ;;  %1092 = vperm.xlu0 %1884, %v1058_v52  }
 0x353   : > { %v1061_v59 = vmin.f32 %v1045_v55, 6.0  ;;  %v989_v60 = vadd.f32 %v1761_v58, %v886_v54  ;;  %v983_v61 = vpop.f32.mrb[5].mxu1  ;;  %v1075_v55 = vld [vmem:[%s2720_s5 + $0x8] sm:$0xff] }
 0x354   : > { %v1060_v62 = vmin.f32 %v1044_v57, 6.0  ;;  %v984_v63 = vadd.f32 %v983_v61, %v885_v56  ;;  %v1074_v56 = vld [vmem:[%s2720_s5] sm:$0xff]  ;;  %v1187_v57 = vld [vmem:[%s2721_s6 + $0x8] sm:$0xff] }
 0x355   : > { %v1047_v1 = vmax.f32 %v989_v60, 0.0  ;;  %v1186_v60 = vld [vmem:[%s2721_s6] sm:$0xff] }
 0x356   : > { %v1046_v3 = vmax.f32 %v984_v63, 0.0  ;;  %v1764_v4 = vpop.f32.mrb[6].mxu1  ;;  %1102 = vperm.xlu1 %1885, %v1060_v62   ;;  %1107 = vperm.xlu0 %1884, %v1061_v59   ;;  %v528_v62 = vld [vmem:[%s2379_s29 + $0x8] sm:$0xff] }
 0x357   : > { %v1063_v5 = vmin.f32 %v1047_v1, 6.0  ;;  %v999_v6 = vadd.f32 %v1764_v4, %v888_v0  ;;  %v993_v7 = vpop.f32.mrb[7].mxu1  ;;  %v527_v1 = vld [vmem:[%s2379_s29] sm:$0xff] }
 0x358   : > { %v1062_v8 = vmin.f32 %v1046_v3, 6.0  ;;  %v994_v9 = vadd.f32 %v993_v7, %v887_v2  ;;  %v1076_v2 = vld [vmem:[%s2720_s5 + $0x10] sm:$0xff]  ;;  %v1077_v3 = vld [vmem:[%s2720_s5 + $0x18] sm:$0xff] }
 0x359   : > { %v1049_v11 = vmax.f32 %v999_v6, 0.0  ;;  %v1188_v6 = vld [vmem:[%s2721_s6 + $0x10] sm:$0xff] }
 0x35a   : > { %v1048_v13 = vmax.f32 %v994_v9, 0.0  ;;  %v1767_v14 = vpop.f32.mrb[8].mxu1  ;;  %1112 = vperm.xlu1 %1885, %v1062_v8   ;;  %1117 = vperm.xlu0 %1884, %v1063_v5   ;;  %v1189_v8 = vld [vmem:[%s2721_s6 + $0x18] sm:$0xff] }
 0x35b   : > { %v1065_v15 = vmin.f32 %v1049_v11, 6.0  ;;  %v1009_v16 = vadd.f32 %v1767_v14, %v890_v10  ;;  %v1003_v17 = vpop.f32.mrb[9].mxu1  ;;  %v529_v11 = vld [vmem:[%s2379_s29 + $0x10] sm:$0xff]  ;;  %v530_v14 = vld [vmem:[%s2379_s29 + $0x18] sm:$0xff] }
 0x35c   : > { %v1064_v18 = vmin.f32 %v1048_v13, 6.0  ;;  %v1004_v20 = vadd.f32 %v1003_v17, %v889_v12 }
 0x35d   : > { %v1051_v22 = vmax.f32 %v1009_v16, 0.0  ;;  %v1079_v16 = vld [vmem:[%s2720_s5 + $0x28] sm:$0xff] }
 0x35e   : > { %v1050_v24 = vmax.f32 %v1004_v20, 0.0  ;;  %v1770_v25 = vpop.f32.mrb[10].mxu1  ;;  %1122 = vperm.xlu1 %1885, %v1064_v18   ;;  %1127 = vperm.xlu0 %1884, %v1065_v15   ;;  %v1078_v15 = vld [vmem:[%s2720_s5 + $0x20] sm:$0xff] }
 0x35f   : > { %v1067_v26 = vmin.f32 %v1051_v22, 6.0  ;;  %v1019_v27 = vadd.f32 %v1770_v25, %v892_v21  ;;  %v1013_v28 = vpop.f32.mrb[11].mxu1  ;;  %v1190_v22 = vld [vmem:[%s2721_s6 + $0x20] sm:$0xff] }
 0x360   : > { %v1066_v29 = vmin.f32 %v1050_v24, 6.0  ;;  %v1014_v30 = vadd.f32 %v1013_v28, %v891_v23  ;;  %v1191_v24 = vld [vmem:[%s2721_s6 + $0x28] sm:$0xff] }
 0x361   : > { %v1053_v32 = vmax.f32 %v1019_v27, 0.0 }
 0x362   : > { %v1052_v34 = vmax.f32 %v1014_v30, 0.0  ;;  %v1773_v35 = vpop.f32.mrb[12].mxu1  ;;  %1132 = vperm.xlu1 %1885, %v1066_v29   ;;  %1137 = vperm.xlu0 %1884, %v1067_v26   ;;  %v531_v29 = vld [vmem:[%s2379_s29 + $0x20] sm:$0xff] }
 0x363   : > { %v1069_v36 = vmin.f32 %v1053_v32, 6.0  ;;  %v1029_v37 = vadd.f32 %v1773_v35, %v894_v31  ;;  %v1023_v38 = vpop.f32.mrb[13].mxu1  ;;  %v532_v32 = vld [vmem:[%s2379_s29 + $0x28] sm:$0xff]  ;;  %v1080_v35 = vld [vmem:[%s2720_s5 + $0x30] sm:$0xff] }
 0x364   : > { %v1068_v39 = vmin.f32 %v1052_v34, 6.0  ;;  %v1024_v40 = vadd.f32 %v1023_v38, %v893_v33 }
 0x365   : > { %v1055_v42 = vmax.f32 %v1029_v37, 0.0 }
 0x366   : > { %v1054_v44 = vmax.f32 %v1024_v40, 0.0  ;;  %v1776_v45 = vpop.f32.mrb[14].mxu1  ;;  %1142 = vperm.xlu1 %1885, %v1068_v39   ;;  %1147 = vperm.xlu0 %1884, %v1069_v36   ;;  %v1081_v36 = vld [vmem:[%s2720_s5 + $0x38] sm:$0xff] }
 0x367   : > { %v1071_v46 = vmin.f32 %v1055_v42, 6.0  ;;  %v1039_v47 = vadd.f32 %v1776_v45, %v896_v41  ;;  %v1033_v48 = vpop.f32.mrb[15].mxu1  ;;  %v1192_v41 = vld [vmem:[%s2721_s6 + $0x30] sm:$0xff] }
 0x368   : > { %v1070_v49 = vmin.f32 %v1054_v44, 6.0  ;;  %v1034_v50 = vadd.f32 %v1033_v48, %v895_v43  ;;  %v1193_v43 = vld [vmem:[%s2721_s6 + $0x38] sm:$0xff]  ;;  %v533_v48 = vld [vmem:[%s2379_s29 + $0x30] sm:$0xff] }
 0x369   : > { %v1057_v51 = vmax.f32 %v1039_v47, 0.0 }
 0x36a   : > { %v1056_v52 = vmax.f32 %v1034_v50, 0.0  ;;  %1152 = vperm.xlu1 %1885, %v1070_v49   ;;  %1157 = vperm.xlu0 %1884, %v1071_v46  }
 0x36b   : > { %v1073_v53 = vmin.f32 %v1057_v51, 6.0  ;;  %v534_v51 = vld [vmem:[%s2379_s29 + $0x38] sm:$0xff] }
 0x36c   : > { %v1072_v54 = vmin.f32 %v1056_v52, 6.0 }
 0x36e   : > { %1162 = vperm.xlu1 %1885, %v1072_v54   ;;  %1167 = vperm.xlu0 %1884, %v1073_v53   ;;  %v1082_v54 = vld [vmem:[%s2720_s5 + $0x40] sm:$0xff] }
 0x3d0   : > { %v1098_v58 = vpop.permute.xlu1 %1097 }
 0x3d1   : > { %v1171_v59 = vmul.f32 %v1098_v58, %v1075_v55  ;;  %v1093_v61 = vpop.permute.xlu0 %1092  ;;  %v1083_v55 = vld [vmem:[%s2720_s5 + $0x48] sm:$0xff] }
 0x3d2   : > { %v1170_v63 = vmul.f32 %v1093_v61, %v1074_v56 }
 0x3d3   : > { %v1203_v0 = vadd.f32 %v1187_v57, %v1171_v59 }
 0x3d4   : > { %v1202_v4 = vadd.f32 %v1186_v60, %v1170_v63  ;;  %v1194_v60 = vld [vmem:[%s2721_s6 + $0x40] sm:$0xff] }
 0x3d5   : > { %v1219_v5 = vadd.f32 %v1203_v0, %v528_v62  ;;  %v1103_v7 = vpop.permute.xlu1 %1102  ;;  %v1108_v9 = vpop.permute.xlu0 %1107  ;;  %v1195_v62 = vld [vmem:[%s2721_s6 + $0x48] sm:$0xff] }
 0x3d6   : > { %v1218_v10 = vadd.f32 %v1202_v4, %v527_v1  ;;  %v1172_v12 = vmul.f32 %v1103_v7, %v1076_v2  ;;  %v1173_v13 = vmul.f32 %v1108_v9, %v1077_v3  ;;  %v535_v4 = vld [vmem:[%s2379_s29 + $0x40] sm:$0xff]  ;;  %v536_v7 = vld [vmem:[%s2379_s29 + $0x48] sm:$0xff] }
 0x3d7   : > { %v1236_v17 = vsub.f32 0.0, %v1219_v5 }
 0x3d8   : > { %v1204_v18 = vadd.f32 %v1188_v6, %v1172_v12  ;;  %v1205_v20 = vadd.f32 %v1189_v8, %v1173_v13  ;;  %v1235_v21 = vsub.f32 0.0, %v1218_v10 }
 0x3d9   : > { %v1113_v23 = vpop.permute.xlu1 %1112  ;;  %v1118_v25 = vpop.permute.xlu0 %1117  ;;  %v1252_v26 = vsel %vm1234_vm2, %v1219_v5, %v1236_v17 }
 0x3da   : > { %v1220_v27 = vadd.f32 %v1204_v18, %v529_v11  ;;  %v1221_v28 = vadd.f32 %v1205_v20, %v530_v14  ;;  %v1174_v30 = vmul.f32 %v1113_v23, %v1078_v15  ;;  %v1175_v31 = vmul.f32 %v1118_v25, %v1079_v16  ;;  %v1085_v11 = vld [vmem:[%s2720_s5 + $0x58] sm:$0xff]  ;;  %v1196_v16 = vld [vmem:[%s2721_s6 + $0x50] sm:$0xff] }
 0x3db   : > { %v1270_v33 = vsel %vm816_vm1, %v1252_v26, 0.0  ;;  %v1251_v34 = vsel %vm1234_vm2, %v1218_v10, %v1235_v21  ;;  %v1084_v10 = vld [vmem:[%s2720_s5 + $0x50] sm:$0xff]  ;;  %v1197_v18 = vld [vmem:[%s2721_s6 + $0x58] sm:$0xff] }
 0x3dc   : > { %v1206_v37 = vadd.f32 %v1190_v22, %v1174_v30  ;;  %v1207_v38 = vadd.f32 %v1191_v24, %v1175_v31  ;;  %1271 = vadd.xlane.f32.xlu0 %v1270_v33  ;;  %v1267_v39 = vsel %vm816_vm1, %v1251_v34, 0.0  ;;  %v1237_v40 = vsub.f32 0.0, %v1220_v27  ;;  %v537_v25 = vld [vmem:[%s2379_s29 + $0x50] sm:$0xff]  ;;  %v1086_v31 = vld [vmem:[%s2720_s5 + $0x60] sm:$0xff] }
 0x3dd   : > { %1268 = vadd.xlane.f32.xlu1 %v1267_v39  ;;  %v1123_v42 = vpop.permute.xlu1 %1122  ;;  %v1128_v44 = vpop.permute.xlu0 %1127  ;;  %v1238_v45 = vsub.f32 0.0, %v1221_v28  ;;  %v1199_v39 = vld [vmem:[%s2721_s6 + $0x68] sm:$0xff] }
 0x3de   : > { %v1222_v46 = vadd.f32 %v1206_v37, %v531_v29  ;;  %v1223_v47 = vadd.f32 %v1207_v38, %v532_v32  ;;  %v1176_v49 = vmul.f32 %v1123_v42, %v1080_v35  ;;  %v1177_v50 = vmul.f32 %v1128_v44, %v1081_v36  ;;  %v1087_v32 = vld [vmem:[%s2720_s5 + $0x68] sm:$0xff]  ;;  %v1198_v37 = vld [vmem:[%s2721_s6 + $0x60] sm:$0xff] }
 0x3df   : > { %v1253_v52 = vsel %vm1234_vm2, %v1220_v27, %v1237_v40  ;;  %v1254_v53 = vsel %vm1234_vm2, %v1221_v28, %v1238_v45  ;;  %v538_v28 = vld [vmem:[%s2379_s29 + $0x58] sm:$0xff]  ;;  %v539_v45 = vld [vmem:[%s2379_s29 + $0x60] sm:$0xff] }
 0x3e0   : > { %v1208_v56 = vadd.f32 %v1192_v41, %v1176_v49  ;;  %v1209_v57 = vadd.f32 %v1193_v43, %v1177_v50  ;;  %v1273_v58 = vsel %vm816_vm1, %v1253_v52, 0.0  ;;  %v1276_v59 = vsel %vm816_vm1, %v1254_v53, 0.0  ;;  %v1089_v52 = vld [vmem:[%s2720_s5 + $0x78] sm:$0xff] }
 0x3e1   : > { %1274 = vadd.xlane.f32.xlu0 %v1273_v58  ;;  %1277 = vadd.xlane.f32.xlu1 %v1276_v59  ;;  %v1133_v61 = vpop.permute.xlu1 %1132  ;;  %v1138_v63 = vpop.permute.xlu0 %1137  ;;  %v1239_v0 = vsub.f32 0.0, %v1222_v46  ;;  %v1240_v1 = vsub.f32 0.0, %v1223_v47  ;;  %v1201_v59 = vld [vmem:[%s2721_s6 + $0x78] sm:$0xff] }
 0x3e2   : > { %v1224_v2 = vadd.f32 %v1208_v56, %v533_v48  ;;  %v1225_v3 = vadd.f32 %v1209_v57, %v534_v51  ;;  %v1178_v5 = vmul.f32 %v1133_v61, %v1082_v54  ;;  %v1179_v6 = vmul.f32 %v1138_v63, %v1083_v55  ;;  %v540_v48 = vld [vmem:[%s2379_s29 + $0x68] sm:$0xff]  ;;  %v1088_v51 = vld [vmem:[%s2720_s5 + $0x70] sm:$0xff] }
 0x3e3   : > { %v1255_v8 = vsel %vm1234_vm2, %v1222_v46, %v1239_v0  ;;  %v1256_v9 = vsel %vm1234_vm2, %v1223_v47, %v1240_v1  ;;  %v1200_v57 = vld [vmem:[%s2721_s6 + $0x70] sm:$0xff] }
 0x3e4   : > { %v1210_v12 = vadd.f32 %v1194_v60, %v1178_v5  ;;  %v1211_v13 = vadd.f32 %v1195_v62, %v1179_v6  ;;  %v1279_v14 = vsel %vm816_vm1, %v1255_v8, 0.0  ;;  %v1282_v15 = vsel %vm816_vm1, %v1256_v9, 0.0 }
 0x3e5   : > { %1280 = vadd.xlane.f32.xlu0 %v1279_v14  ;;  %1283 = vadd.xlane.f32.xlu1 %v1282_v15  ;;  %v1143_v17 = vpop.permute.xlu1 %1142  ;;  %v1148_v20 = vpop.permute.xlu0 %1147  ;;  %v1241_v21 = vsub.f32 0.0, %v1224_v2  ;;  %v1242_v22 = vsub.f32 0.0, %v1225_v3 }
 0x3e6   : > { %v1226_v23 = vadd.f32 %v1210_v12, %v535_v4  ;;  %v1227_v24 = vadd.f32 %v1211_v13, %v536_v7  ;;  %v1180_v26 = vmul.f32 %v1143_v17, %v1084_v10  ;;  %v1181_v27 = vmul.f32 %v1148_v20, %v1085_v11  ;;  %v542_v4 = vld [vmem:[%s2379_s29 + $0x78] sm:$0xff] }
 0x3e7   : > { %v1257_v29 = vsel %vm1234_vm2, %v1224_v2, %v1241_v21  ;;  %v1258_v30 = vsel %vm1234_vm2, %v1225_v3, %v1242_v22  ;;  %v541_v3 = vld [vmem:[%s2379_s29 + $0x70] sm:$0xff]  ;;  %s339_s29 = sand.u32 1, %s1972_s10  }
 0x3e8   : > { %v1212_v33 = vadd.f32 %v1196_v16, %v1180_v26  ;;  %v1213_v34 = vadd.f32 %v1197_v18, %v1181_v27  ;;  %v1285_v35 = vsel %vm816_vm1, %v1257_v29, 0.0  ;;  %v1288_v36 = vsel %vm816_vm1, %v1258_v30, 0.0  ;;  %s1569_s27 = sshll.u32 %s339_s29, 8  ;;  %v1886_v29 = vld [vmem:[%s2093_s25 + $0x10] sm:$0xff]  ;;  %s2674_s26 = scalar_lea.sflag [#allocation3], %s339_s29 }
 0x3e9   : > { %1286 = vadd.xlane.f32.xlu0 %v1285_v35  ;;  %1289 = vadd.xlane.f32.xlu1 %v1288_v36  ;;  %v1153_v38 = vpop.permute.xlu1 %1152  ;;  %v1158_v40 = vpop.permute.xlu0 %1157  ;;  %v1243_v41 = vsub.f32 0.0, %v1226_v23  ;;  %v1244_v42 = vsub.f32 0.0, %v1227_v24  ;;  %v1983_v27 = vmov 0.0   ;;  %v1889_v36 = vld [vmem:[%s2093_s25 + $0x8] sm:$0xff]  ;;  %s2559_s21 = scalar_lea.vmem [#allocation2], %s1569_s27 }
 0x3ea   : > { %v1228_v43 = vadd.f32 %v1212_v33, %v537_v25  ;;  %v1229_v44 = vadd.f32 %v1213_v34, %v538_v28  ;;  %v1182_v46 = vmul.f32 %v1153_v38, %v1086_v31  ;;  %v1183_v47 = vmul.f32 %v1158_v40, %v1087_v32  ;;  %v1887_v31 = vld [vmem:[%s2093_s25 + $0x18] sm:$0xff]  ;;  %v1888_v34 = vld [vmem:[%s2093_s25] sm:$0xff]  ;;  %s1463_s17 = sshll.u32 %s2559_s21, 4  ;;  %s2662_s17 = int_to_ptr.vmem [resolvable:$true] %s1463_s17 }
 0x3eb   : > { %v1259_v49 = vsel %vm1234_vm2, %v1226_v23, %v1243_v41  ;;  %v1260_v50 = vsel %vm1234_vm2, %v1227_v24, %v1244_v42  ;;  %v1890_v42 = vld [vmem:[%s2093_s25 + $0x30] sm:$0xff]  ;;  %s1918_s27 = scalar_lea.vmem %s2662_s17, 4096  ;;  %p1925_p0 = scmp.lt.s32.totalorder %s2662_s17, %s1923_s14 }
 0x3ec   : > { %v1214_v53 = vadd.f32 %v1198_v37, %v1182_v46  ;;  %v1215_v54 = vadd.f32 %v1199_v39, %v1183_v47  ;;  %v1291_v55 = vsel %vm816_vm1, %v1259_v49, 0.0  ;;  %v1294_v56 = vsel %vm816_vm1, %v1260_v50, 0.0  ;;  %v1892_v46 = vld [vmem:[%s2093_s25 + $0x20] sm:$0xff]  ;;  %p1919_p11 = scmp.ne.s32.totalorder %s2662_s17, %s1918_s27 }
 0x3ed   : > { %1292 = vadd.xlane.f32.xlu0 %v1291_v55  ;;  %1295 = vadd.xlane.f32.xlu1 %v1294_v56  ;;  %v1163_v58 = vpop.permute.xlu1 %1162  ;;  %v1168_v60 = vpop.permute.xlu0 %1167  ;;  %v1245_v61 = vsub.f32 0.0, %v1228_v43  ;;  %v1246_v62 = vsub.f32 0.0, %v1229_v44  ;;  %v1895_v56 = vld [vmem:[%s2093_s25 + $0x58] sm:$0xff] }
 0x3ee   : > { %v1230_v63 = vadd.f32 %v1214_v53, %v539_v45  ;;  %v1231_v0 = vadd.f32 %v1215_v54, %v540_v48  ;;  %v1184_v1 = vmul.f32 %v1163_v58, %v1088_v51  ;;  %v1185_v2 = vmul.f32 %v1168_v60, %v1089_v52  ;;  %v1893_v48 = vld [vmem:[%s2093_s25 + $0x28] sm:$0xff]  ;;  %v1894_v54 = vld [vmem:[%s2093_s25 + $0x50] sm:$0xff]  ;;  %v1896_v58 = vld [vmem:[%s2093_s25 + $0x40] sm:$0xff]  ;;  %p1920_p12 = pnand %p1919_p11, %p2075_p5 }
 0x3ef   : > { %v1261_v5 = vsel %vm1234_vm2, %v1228_v43, %v1245_v61  ;;  %v1262_v6 = vsel %vm1234_vm2, %v1229_v44, %v1246_v62  ;;  %v1891_v44 = vld [vmem:[%s2093_s25 + $0x38] sm:$0xff]  ;;  %v1897_v60 = vld [vmem:[%s2093_s25 + $0x48] sm:$0xff] }
 0x3f0   : > { %v1248_v7 = vsub.f32 0.0, %v1231_v0  ;;  %v1216_v8 = vadd.f32 %v1200_v57, %v1184_v1  ;;  %v1217_v9 = vadd.f32 %v1201_v59, %v1185_v2  ;;  %v1297_v10 = vsel %vm816_vm1, %v1261_v5, 0.0  ;;  %v1898_v2 = vld [vmem:[%s2093_s25 + $0x70] sm:$0xff]  ;;  %p1921_p13 = pneg %p1920_p12 }
 0x3f1   : > { %1298 = vadd.xlane.f32.xlu0 %v1297_v10  ;;  %v1300_v11 = vsel %vm816_vm1, %v1262_v6, 0.0  ;;  %v1247_v12 = vsub.f32 0.0, %v1230_v63  ;;  %v1900_v6 = vld [vmem:[%s2093_s25 + $0x60] sm:$0xff] }
 0x3f2   : > { %v1232_v13 = vadd.f32 %v1216_v8, %v541_v3  ;;  %v1233_v14 = vadd.f32 %v1217_v9, %v542_v4  ;;  %1301 = vadd.xlane.f32.xlu1 %v1300_v11  ;;  %v1264_v15 = vsel %vm1234_vm2, %v1231_v0, %v1248_v7  ;;  %v1899_v4 = vld [vmem:[%s2093_s25 + $0x78] sm:$0xff]  ;;  %v1901_v8 = vld [vmem:[%s2093_s25 + $0x68] sm:$0xff] }
 0x3f3   : > { %v1263_v16 = vsel %vm1234_vm2, %v1230_v63, %v1247_v12  ;;  %v1306_v17 = vsel %vm816_vm1, %v1264_v15, 0.0 }
 0x3f4   : > { %v1250_v18 = vsub.f32 0.0, %v1233_v14  ;;  %v1303_v20 = vsel %vm816_vm1, %v1263_v16, 0.0  ;;  %v1249_v21 = vsub.f32 0.0, %v1232_v13  ;;  %v1903_v16 = vld [vmem:[%s2093_s25 + $0x98] sm:$0xff] }
 0x3f5   : > { %1304 = vadd.xlane.f32.xlu0 %v1303_v20 }
 0x3f6   : > { %1307 = vadd.xlane.f32.xlu1 %v1306_v17  ;;  %v1265_v22 = vsel %vm1234_vm2, %v1232_v13, %v1249_v21  ;;  %v1266_v23 = vsel %vm1234_vm2, %v1233_v14, %v1250_v18  ;;  %v1902_v14 = vld [vmem:[%s2093_s25 + $0x90] sm:$0xff]  ;;  %v1904_v18 = vld [vmem:[%s2093_s25 + $0x80] sm:$0xff]  ;;  %v1905_v21 = vld [vmem:[%s2093_s25 + $0x88] sm:$0xff] }
 0x3f7   : > { %v1309_v24 = vsel %vm816_vm1, %v1265_v22, 0.0  ;;  %v1312_v25 = vsel %vm816_vm1, %v1266_v23, 0.0 }
 0x3f9   : > { %1310 = vadd.xlane.f32.xlu0 %v1309_v24 }
 0x3fa   : > { %1313 = vadd.xlane.f32.xlu1 %v1312_v25 }
 0x469   : > { %v1272_v19 = vpop.xlane.xlu0 %1271 }
 0x46a   : > { %vm1316_vm4 = vcmp.gt.f32.partialorder %v1272_v19, 0.0  ;;  %v1269_v26 = vpop.xlane.xlu1 %1268 }
 0x46b   : > { %v1577_v28 = vsel %vm1316_vm4, 1.0, %v1983_v27  ;;  %vm1315_vm5 = vcmp.gt.f32.partialorder %v1269_v26, 0.0  ;;  %v1906_v26 = vld [vmem:[%s2093_s25 + $0xa0] sm:$0xff] }
 0x46c   : > { %1365 = vst.msk [vmem:[%s2547_s16 + $0x8] sm:$0xff] %vm1363_vm3, %v1577_v28  ;;  %v1382_v30 = vmul.f32 %v1886_v29, %v1577_v28  ;;  %v1383_v32 = vmul.f32 %v1887_v31, %v1577_v28  ;;  %v1576_v33 = vsel %vm1315_vm5, 1.0, %v1983_v27  ;;  %v1907_v29 = vld [vmem:[%s2093_s25 + $0xa8] sm:$0xff]  ;;  %v1908_v31 = vld [vmem:[%s2093_s25 + $0xb0] sm:$0xff] }
 0x46d   : > { %1364 = vst.msk [vmem:[%s2547_s16] sm:$0xff] %vm1363_vm3, %v1576_v33  ;;  %v1380_v35 = vmul.f32 %v1888_v34, %v1576_v33  ;;  %v1381_v37 = vmul.f32 %v1889_v36, %v1576_v33  ;;  %v1909_v33 = vld [vmem:[%s2093_s25 + $0xb8] sm:$0xff] }
 0x46e   : > { %1414 = vst [vmem:[%s2559_s21 + $0x10] sm:$0xff] %v1382_v30  ;;  %1415 = vst [vmem:[%s2559_s21 + $0x18] sm:$0xff] %v1383_v32  ;;  %v1278_v38 = vpop.xlane.xlu1 %1277  ;;  %v1275_v39 = vpop.xlane.xlu0 %1274 }
 0x46f   : > { %1412 = vst [vmem:[%s2559_s21] sm:$0xff] %v1380_v35  ;;  %1413 = vst [vmem:[%s2559_s21 + $0x8] sm:$0xff] %v1381_v37  ;;  %vm1318_vm6 = vcmp.gt.f32.partialorder %v1278_v38, 0.0  ;;  %vm1317_vm7 = vcmp.gt.f32.partialorder %v1275_v39, 0.0  ;;  %v1910_v39 = vld [vmem:[%s2093_s25 + $0xc0] sm:$0xff] }
 0x470   : > { %v1579_v40 = vsel %vm1318_vm6, 1.0, %v1983_v27  ;;  %v1578_v41 = vsel %vm1317_vm7, 1.0, %v1983_v27 }
 0x471   : > { %1367 = vst.msk [vmem:[%s2547_s16 + $0x18] sm:$0xff] %vm1363_vm3, %v1579_v40  ;;  %v1386_v43 = vmul.f32 %v1890_v42, %v1579_v40  ;;  %v1387_v45 = vmul.f32 %v1891_v44, %v1579_v40  ;;  %1366 = vst.msk [vmem:[%s2547_s16 + $0x10] sm:$0xff] %vm1363_vm3, %v1578_v41  ;;  %v1384_v47 = vmul.f32 %v1892_v46, %v1578_v41 }
 0x472   : > { %v1385_v49 = vmul.f32 %v1893_v48, %v1578_v41  ;;  %v1284_v50 = vpop.xlane.xlu1 %1283  ;;  %v1281_v51 = vpop.xlane.xlu0 %1280  ;;  %v1911_v41 = vld [vmem:[%s2093_s25 + $0xc8] sm:$0xff] }
 0x473   : > { %1418 = vst [vmem:[%s2559_s21 + $0x30] sm:$0xff] %v1386_v43  ;;  %1419 = vst [vmem:[%s2559_s21 + $0x38] sm:$0xff] %v1387_v45  ;;  %vm1320_vm8 = vcmp.gt.f32.partialorder %v1284_v50, 0.0  ;;  %vm1319_vm9 = vcmp.gt.f32.partialorder %v1281_v51, 0.0  ;;  %v1912_v43 = vld [vmem:[%s2093_s25 + $0xd0] sm:$0xff]  ;;  %v1913_v45 = vld [vmem:[%s2093_s25 + $0xd8] sm:$0xff] }
 0x474   : > { %1416 = vst [vmem:[%s2559_s21 + $0x20] sm:$0xff] %v1384_v47  ;;  %1417 = vst [vmem:[%s2559_s21 + $0x28] sm:$0xff] %v1385_v49  ;;  %v1581_v52 = vsel %vm1320_vm8, 1.0, %v1983_v27  ;;  %v1580_v53 = vsel %vm1319_vm9, 1.0, %v1983_v27  ;;  %v1914_v51 = vld [vmem:[%s2093_s25 + $0xe0] sm:$0xff] }
 0x475   : > { %1369 = vst.msk [vmem:[%s2547_s16 + $0x28] sm:$0xff] %vm1363_vm3, %v1581_v52  ;;  %v1390_v55 = vmul.f32 %v1894_v54, %v1581_v52  ;;  %v1391_v57 = vmul.f32 %v1895_v56, %v1581_v52  ;;  %1368 = vst.msk [vmem:[%s2547_s16 + $0x20] sm:$0xff] %vm1363_vm3, %v1580_v53  ;;  %v1388_v59 = vmul.f32 %v1896_v58, %v1580_v53  ;;  %v1917_v56 = vld [vmem:[%s2093_s25 + $0xf8] sm:$0xff] }
 0x476   : > { %v1389_v61 = vmul.f32 %v1897_v60, %v1580_v53  ;;  %v1290_v62 = vpop.xlane.xlu1 %1289  ;;  %v1287_v63 = vpop.xlane.xlu0 %1286  ;;  %v1915_v53 = vld [vmem:[%s2093_s25 + $0xe8] sm:$0xff] }
 0x477   : > { %1422 = vst [vmem:[%s2559_s21 + $0x50] sm:$0xff] %v1390_v55  ;;  %1423 = vst [vmem:[%s2559_s21 + $0x58] sm:$0xff] %v1391_v57  ;;  %vm1322_vm10 = vcmp.gt.f32.partialorder %v1290_v62, 0.0  ;;  %vm1321_vm11 = vcmp.gt.f32.partialorder %v1287_v63, 0.0 }
 0x478   : > { %1420 = vst [vmem:[%s2559_s21 + $0x40] sm:$0xff] %v1388_v59  ;;  %1421 = vst [vmem:[%s2559_s21 + $0x48] sm:$0xff] %v1389_v61  ;;  %v1583_v0 = vsel %vm1322_vm10, 1.0, %v1983_v27  ;;  %v1582_v1 = vsel %vm1321_vm11, 1.0, %v1983_v27 }
 0x479   : > { %1371 = vst.msk [vmem:[%s2547_s16 + $0x38] sm:$0xff] %vm1363_vm3, %v1583_v0  ;;  %v1394_v3 = vmul.f32 %v1898_v2, %v1583_v0  ;;  %v1395_v5 = vmul.f32 %v1899_v4, %v1583_v0  ;;  %1370 = vst.msk [vmem:[%s2547_s16 + $0x30] sm:$0xff] %vm1363_vm3, %v1582_v1  ;;  %v1392_v7 = vmul.f32 %v1900_v6, %v1582_v1 }
 0x47a   : > { %v1393_v9 = vmul.f32 %v1901_v8, %v1582_v1  ;;  %v1296_v10 = vpop.xlane.xlu1 %1295  ;;  %v1293_v11 = vpop.xlane.xlu0 %1292 }
 0x47b   : > { %1426 = vst [vmem:[%s2559_s21 + $0x70] sm:$0xff] %v1394_v3  ;;  %1427 = vst [vmem:[%s2559_s21 + $0x78] sm:$0xff] %v1395_v5  ;;  %vm1324_vm12 = vcmp.gt.f32.partialorder %v1296_v10, 0.0  ;;  %vm1323_vm13 = vcmp.gt.f32.partialorder %v1293_v11, 0.0 }
 0x47c   : > { %1424 = vst [vmem:[%s2559_s21 + $0x60] sm:$0xff] %v1392_v7  ;;  %1425 = vst [vmem:[%s2559_s21 + $0x68] sm:$0xff] %v1393_v9  ;;  %v1585_v12 = vsel %vm1324_vm12, 1.0, %v1983_v27  ;;  %v1584_v13 = vsel %vm1323_vm13, 1.0, %v1983_v27 }
 0x47d   : > { %1373 = vst.msk [vmem:[%s2547_s16 + $0x48] sm:$0xff] %vm1363_vm3, %v1585_v12  ;;  %v1398_v15 = vmul.f32 %v1902_v14, %v1585_v12  ;;  %v1399_v17 = vmul.f32 %v1903_v16, %v1585_v12  ;;  %1372 = vst.msk [vmem:[%s2547_s16 + $0x40] sm:$0xff] %vm1363_vm3, %v1584_v13  ;;  %v1396_v20 = vmul.f32 %v1904_v18, %v1584_v13 }
 0x47e   : > { %v1397_v22 = vmul.f32 %v1905_v21, %v1584_v13  ;;  %v1299_v23 = vpop.xlane.xlu0 %1298 }
 0x47f   : > { %1430 = vst [vmem:[%s2559_s21 + $0x90] sm:$0xff] %v1398_v15  ;;  %1431 = vst [vmem:[%s2559_s21 + $0x98] sm:$0xff] %v1399_v17  ;;  %v1302_v24 = vpop.xlane.xlu1 %1301  ;;  %vm1325_vm14 = vcmp.gt.f32.partialorder %v1299_v23, 0.0 }
 0x480   : > { %1428 = vst [vmem:[%s2559_s21 + $0x80] sm:$0xff] %v1396_v20  ;;  %1429 = vst [vmem:[%s2559_s21 + $0x88] sm:$0xff] %v1397_v22  ;;  %vm1326_vm15 = vcmp.gt.f32.partialorder %v1302_v24, 0.0  ;;  %v1586_v25 = vsel %vm1325_vm14, 1.0, %v1983_v27 }
 0x481   : > { %v1587_v19 = vsel %vm1326_vm15, 1.0, %v1983_v27  ;;  %1374 = vst.msk [vmem:[%s2547_s16 + $0x50] sm:$0xff] %vm1363_vm3, %v1586_v25  ;;  %v1400_v28 = vmul.f32 %v1906_v26, %v1586_v25  ;;  %v1401_v30 = vmul.f32 %v1907_v29, %v1586_v25 }
 0x482   : > { %1375 = vst.msk [vmem:[%s2547_s16 + $0x58] sm:$0xff] %vm1363_vm3, %v1587_v19  ;;  %v1402_v32 = vmul.f32 %v1908_v31, %v1587_v19  ;;  %v1403_v34 = vmul.f32 %v1909_v33, %v1587_v19  ;;  %v1305_v35 = vpop.xlane.xlu0 %1304 }
 0x483   : > { %1432 = vst [vmem:[%s2559_s21 + $0xa0] sm:$0xff] %v1400_v28  ;;  %1433 = vst [vmem:[%s2559_s21 + $0xa8] sm:$0xff] %v1401_v30  ;;  %v1308_v36 = vpop.xlane.xlu1 %1307  ;;  %vm1327_vm0 = vcmp.gt.f32.partialorder %v1305_v35, 0.0 }
 0x484   : > { %1434 = vst [vmem:[%s2559_s21 + $0xb0] sm:$0xff] %v1402_v32  ;;  %1435 = vst [vmem:[%s2559_s21 + $0xb8] sm:$0xff] %v1403_v34  ;;  %vm1328_vm1 = vcmp.gt.f32.partialorder %v1308_v36, 0.0  ;;  %v1588_v37 = vsel %vm1327_vm0, 1.0, %v1983_v27 }
 0x485   : > { %v1589_v38 = vsel %vm1328_vm1, 1.0, %v1983_v27  ;;  %1376 = vst.msk [vmem:[%s2547_s16 + $0x60] sm:$0xff] %vm1363_vm3, %v1588_v37  ;;  %v1404_v40 = vmul.f32 %v1910_v39, %v1588_v37  ;;  %v1405_v42 = vmul.f32 %v1911_v41, %v1588_v37 }
 0x486   : > { %1377 = vst.msk [vmem:[%s2547_s16 + $0x68] sm:$0xff] %vm1363_vm3, %v1589_v38  ;;  %v1406_v44 = vmul.f32 %v1912_v43, %v1589_v38  ;;  %v1407_v46 = vmul.f32 %v1913_v45, %v1589_v38  ;;  %v1311_v47 = vpop.xlane.xlu0 %1310 }
 0x487   : > { %1436 = vst [vmem:[%s2559_s21 + $0xc0] sm:$0xff] %v1404_v40  ;;  %1437 = vst [vmem:[%s2559_s21 + $0xc8] sm:$0xff] %v1405_v42  ;;  %v1314_v48 = vpop.xlane.xlu1 %1313  ;;  %vm1329_vm2 = vcmp.gt.f32.partialorder %v1311_v47, 0.0 }
 0x488   : > { %1438 = vst [vmem:[%s2559_s21 + $0xd0] sm:$0xff] %v1406_v44  ;;  %1439 = vst [vmem:[%s2559_s21 + $0xd8] sm:$0xff] %v1407_v46  ;;  %vm1330_vm4 = vcmp.gt.f32.partialorder %v1314_v48, 0.0  ;;  %v1590_v49 = vsel %vm1329_vm2, 1.0, %v1983_v27 }
 0x489   : > { %v1591_v50 = vsel %vm1330_vm4, 1.0, %v1983_v27  ;;  %1378 = vst.msk [vmem:[%s2547_s16 + $0x70] sm:$0xff] %vm1363_vm3, %v1590_v49  ;;  %v1408_v52 = vmul.f32 %v1914_v51, %v1590_v49  ;;  %v1409_v54 = vmul.f32 %v1915_v53, %v1590_v49  ;;  %v1916_v27 = vld [vmem:[%s2093_s25 + $0xf0] sm:$0xff] }
 0x48a   : > { %1379 = vst.msk [vmem:[%s2547_s16 + $0x78] sm:$0xff] %vm1363_vm3, %v1591_v50  ;;  %v1410_v55 = vmul.f32 %v1916_v27, %v1591_v50  ;;  %v1411_v57 = vmul.f32 %v1917_v56, %v1591_v50  ;;  %s1924_s16 = scalar_lea.vmem %s1923_s14, 8192 }
 0x48b   : > { %1440 = vst [vmem:[%s2559_s21 + $0xe0] sm:$0xff] %v1408_v52  ;;  %1441 = vst [vmem:[%s2559_s21 + $0xe8] sm:$0xff] %v1409_v54  ;;  %p1926_p1 = scmp.lt.s32.totalorder %s1924_s16, %s1918_s27 }
 0x48c   : > { %1442 = vst [vmem:[%s2559_s21 + $0xf0] sm:$0xff] %v1410_v55  ;;  %1443 = vst [vmem:[%s2559_s21 + $0xf8] sm:$0xff] %v1411_v57 }
 0x48d   : > { %p1927_p2 = por %p1926_p1, %p1925_p0 }
 0x48f   : > { %p1928_p3 = pnand %p1927_p2, %p1921_p13 }
 0x491   : > { %1931 = shalt.err (!%p1928_p3)
}
 0x492   : > { %s1932_s25 = scalar_lea.hbm %s2660_s24, 4096  ;;  %s1936_s23 = scalar_lea.hbm %s2723_s8, 8192 }
 0x493   : > { %p1933_p4 = scmp.ne.s32.totalorder %s2660_s24, %s1932_s25  ;;  %p1937_p9 = scmp.lt.u32.totalorder %s2660_s24, %s2723_s8 }
 0x494   : > { %p1938_p10 = scmp.lt.u32.totalorder %s1936_s23, %s1932_s25  ;;  %p1940_p12 = scmp.lt.u32.totalorder %s1932_s25, %s2660_s24 }
 0x495   : > { %p1934_p7 = pnand %p1933_p4, %p2075_p5 }
 0x496   : > { %p1939_p11 = por %p1938_p10, %p1937_p9 }
 0x497   : > { %p1935_p8 = pneg %p1934_p7 }
 0x498   : > { %p1941_p13 = por %p1940_p12, %p1939_p11 }
 0x49a   : > { %p1942_p0 = pnand %p1941_p13, %p1935_p8 }
 0x49c   : > { %1945 = shalt.err (!%p1942_p0)
}
 0x49d   : > { %s1985_s27 = smov 256   ;;  %s1986_s28 = smov 16  }
 0x49e   : > { %1841 = dma.vmem_to_hbm [thread:$0]  (%p2075_p5), %s2662_s17, 4096, %s2660_s24, %s2674_s26, %s1985_s27, %s1985_s27, %s1986_s28  }
 0x49f PF: > { %p1847_p1 = scmp.ge.s32.totalorder %s1980_s12, 2  ;;  %s1481_s14 = sand.u32 1, %s1968_s30  }
 0x4a0   : > { %s1482_s16 = scalar_lea.sflag [#allocation3], %s1481_s14 }
 0x4a1   : > { %p1844_p2 = pnand %p1847_p1, %p2079_p6 }
 0x4a3   : > { %1963 = dma.done.wait (!%p1844_p2), %s1482_s16, 4096  }
 0x4a4   : > { %1965 = vsyncadd (!%p1844_p2), %s1482_s16, 4294963200  ;;  %p20_p3 = scmp.ge.s32.totalorder %s2062_s15, 4   ;;  %s2727_s30 = smov %s1972_s10 }
 0x4a5   : > { %s2728_s10 = smov %s1976_s11  ;;  %s2729_s11 = smov %s2073_s18 }
 0x4a6   : > { %s2730_s12 = smov %s2062_s15  ;;  %22 = sbr.rel (!%p20_p3) target bundleno = 3 (0x3), region = 102 }
 0x4ad   :  { %1495 = vsyncpa [#allocation3], 1 }
 0x4ae   :  { %1497 = vsyncpa [#allocation3 + $0x1], 1 }

</bundles_post_ra>
